<compile_context>
chip_gen: v5e
topology: v5e:2x2
jax: 0.10.0
libtpu: 0.0.40
codegen_flags: <defaults>
</compile_context>

<pallas_src>
import math
from functools import partial

import jax
import jax.numpy as jnp
from jax.experimental import pallas as pl
from jax.experimental.pallas import tpu as pltpu


# ----------------------------------------------------------------------------
# Fused decoder kernel: grid = (batch, layer); one grid step == one layer of
# one batch element.
# ----------------------------------------------------------------------------

def _decoder_kernel(
    # per-batch inputs (block index follows the batch grid axis)
    x0_ref, eo_ref, lab_ref, tmb_ref,
    # per-layer stacked parameters (block index follows the layer grid axis)
    na_ref, nb_ref,
    wqkv1_ref, bqkv1_ref, wo1_ref, bo1_ref,
    wq2_ref, bq2_ref, wkv2_ref, bkv2_ref, wo2_ref, bo2_ref,
    w1_ref, b1_ref, w2_ref, b2_ref,
    # final norm parameters (constant block index)
    fa_ref, fb_ref,
    # output
    o_ref,
    # scratch
    x_sc, qh_sc, k1_sc, v1_sc, k2_sc, v2_sc, attn_sc,
    *, heads, d_model,
):
    layer = pl.program_id(1)
    D = d_model
    dk = D // heads

    # ---- prime residual stream once per batch tile --------------------------
    # (embed*sqrt(D) + PE already folded into x0 in the wrapper)
    @pl.when(layer == 0)
    def _():
        x_sc[...] = x0_ref[0]

    # ---- helpers -------------------------------------------------------------
    def norm_rows(x, a, b):
        # torch Norm: alpha*(x-mean)/(std+eps)+bias, unbiased std, f32 stats.
        mean = jnp.mean(x, axis=-1, keepdims=True)
        var = jnp.sum((x - mean) ** 2, axis=-1, keepdims=True) * (1.0 / (D - 1))
        # exact reciprocal here: approx error would compound across N layers.
        return a * (x - mean) / (jnp.sqrt(var) + 1e-6) + b

    def attention(k_ref, v_ref, bias):
        # Head-batched attention: one QK^T, one softmax, one PV.
        q = qh_sc[...]                                   # (H, Sq, dk) bf16
        k = k_ref[...]                                   # (H, Sk, dk) bf16
        v = v_ref[...]
        s = jnp.einsum("hqd,hkd->hqk", q, k,
                       preferred_element_type=jnp.float32)     # (H, Sq, Sk)
        s = s + bias[None, :, :]                         # additive mask bias
        m = jnp.max(s, axis=-1, keepdims=True)
        e = jnp.exp(s - m)
        denom = jnp.sum(e, axis=-1, keepdims=True)
        p = (e * pl.reciprocal(denom, approx=True)).astype(jnp.bfloat16)
        out = jnp.einsum("hqk,hkd->hqd", p, v,
                         preferred_element_type=jnp.float32)   # (H, Sq, dk)
        # head-major -> token-major slab (static stores, no concatenate)
        for h in range(heads):
            attn_sc[:, h * dk:(h + 1) * dk] = out[h].astype(jnp.bfloat16)
        return attn_sc[...]                              # (Sq, D) bf16

    na = na_ref[0]   # (3, D): alphas for norm_1, norm_2, norm_3
    nb = nb_ref[0]   # (3, D)

    # ---- sub-block 1: masked self attention (fused QKV projection) ----------
    x = x_sc[...]                                        # (S, D) f32
    x2 = norm_rows(x, na[0:1], nb[0:1]).astype(jnp.bfloat16)
    qkv = jnp.dot(x2, wqkv1_ref[0],
                  preferred_element_type=jnp.float32) + bqkv1_ref[0]   # (S, 3D)
    for h in range(heads):
        qh_sc[h] = qkv[:, h * dk:(h + 1) * dk].astype(jnp.bfloat16)
        k1_sc[h] = qkv[:, D + h * dk:D + (h + 1) * dk].astype(jnp.bfloat16)
        v1_sc[h] = qkv[:, 2 * D + h * dk:2 * D + (h + 1) * dk].astype(jnp.bfloat16)
    attn = attention(k1_sc, v1_sc, lab_ref[0])
    x = x + jnp.dot(attn, wo1_ref[0],
                    preferred_element_type=jnp.float32) + bo1_ref[0]

    # ---- sub-block 2: cross attention over encoder outputs ------------------
    x2 = norm_rows(x, na[1:2], nb[1:2]).astype(jnp.bfloat16)
    q_all = jnp.dot(x2, wq2_ref[0],
                    preferred_element_type=jnp.float32) + bq2_ref[0]   # (S, D)
    kv = jnp.dot(eo_ref[0], wkv2_ref[0],
                 preferred_element_type=jnp.float32) + bkv2_ref[0]     # (Se, 2D)
    for h in range(heads):
        qh_sc[h] = q_all[:, h * dk:(h + 1) * dk].astype(jnp.bfloat16)
        k2_sc[h] = kv[:, h * dk:(h + 1) * dk].astype(jnp.bfloat16)
        v2_sc[h] = kv[:, D + h * dk:D + (h + 1) * dk].astype(jnp.bfloat16)
    attn = attention(k2_sc, v2_sc, tmb_ref[0])
    x = x + jnp.dot(attn, wo2_ref[0],
                    preferred_element_type=jnp.float32) + bo2_ref[0]

    # ---- sub-block 3: feed forward -------------------------------------------
    x2 = norm_rows(x, na[2:3], nb[2:3]).astype(jnp.bfloat16)
    h1 = jnp.maximum(
        jnp.dot(x2, w1_ref[0], preferred_element_type=jnp.float32) + b1_ref[0],
        0.0).astype(jnp.bfloat16)
    x = x + jnp.dot(h1, w2_ref[0],
                    preferred_element_type=jnp.float32) + b2_ref[0]

    x_sc[...] = x   # carry residual stream to the next layer (VMEM resident)

    # ---- last layer: final Norm, single write-back ---------------------------
    @pl.when(layer == pl.num_programs(1) - 1)
    def _():
        o_ref[0] = norm_rows(x, fa_ref[...], fb_ref[...])


# ----------------------------------------------------------------------------
# VMEM limit: raise scoped limit toward physical (defaults are 16/32 MiB)
# ----------------------------------------------------------------------------

def _vmem_limit_bytes():
    try:
        cap = pltpu.get_tpu_info().vmem_capacity_bytes
        limit = int(min(cap - 16 * 1024 * 1024, 100 * 1024 * 1024))
        return limit if limit > 0 else None
    except Exception:
        return None   # fall back to compiler default


# ----------------------------------------------------------------------------
# Decoder forward (single pallas_call)
# ----------------------------------------------------------------------------

def decoder_forward(params, trg, e_outputs, look_ahead_mask, trg_mask, pe, *, heads):
    B, S = trg.shape
    D = params["embed"].shape[1]
    Se = e_outputs.shape[1]
    N = params["wqkv1"].shape[0]
    dk = D // heads

    # Glue (plain JAX): embedding gather + sqrt(D) scale + positional encoding
    # folded into a single x0 slab; masks converted to additive biases.
    x0 = (jnp.take(params["embed"], trg, axis=0).astype(jnp.float32)
          * jnp.float32(math.sqrt(D))
          + pe[:S].astype(jnp.float32)[None])                      # (B, S, D)
    eo = e_outputs.astype(jnp.bfloat16)                            # (B, Se, D)
    la = look_ahead_mask.reshape(B, S, S)
    tm = trg_mask.reshape(B, S, Se)
    lab = jnp.where(la == 0, jnp.float32(-1e9), jnp.float32(0.0))  # (B, S, S)
    tmb = jnp.where(tm == 0, jnp.float32(-1e9), jnp.float32(0.0))  # (B, S, Se)

    def batch_spec(shape):
        # per-batch blocks: follow the (parallel) batch grid axis
        return pl.BlockSpec((1,) + tuple(shape[1:]), lambda b, l: (b, 0, 0))

    def layer_spec(shape):
        # stacked per-layer params: follow the (sequential) layer grid axis
        return pl.BlockSpec((1,) + tuple(shape[1:]), lambda b, l: (l, 0, 0))

    kernel = partial(_decoder_kernel, heads=heads, d_model=D)

    out = pl.pallas_call(
        kernel,
        out_shape=jax.ShapeDtypeStruct((B, S, D), jnp.float32),
        grid=(B, N),
        in_specs=[
            batch_spec(x0.shape),                         # x0 (embed+PE)
            batch_spec(eo.shape),                         # encoder outputs
            batch_spec(lab.shape),                        # look-ahead bias
            batch_spec(tmb.shape),                        # cross-mask bias
            layer_spec(params["norms_a"].shape),          # norm alphas
            layer_spec(params["norms_b"].shape),          # norm biases
            layer_spec(params["wqkv1"].shape),            # self-attn W_qkv
            layer_spec(params["bqkv1"].shape),            # self-attn b_qkv
            layer_spec(params["wo1"].shape),              # self-attn W_o
            layer_spec(params["bo1"].shape),              # self-attn b_o
            layer_spec(params["wq2"].shape),              # cross-attn W_q
            layer_spec(params["bq2"].shape),              # cross-attn b_q
            layer_spec(params["wkv2"].shape),             # cross-attn W_kv
            layer_spec(params["bkv2"].shape),             # cross-attn b_kv
            layer_spec(params["wo2"].shape),              # cross-attn W_o
            layer_spec(params["bo2"].shape),              # cross-attn b_o
            layer_spec(params["w1"].shape),               # FF W1
            layer_spec(params["b1"].shape),               # FF b1
            layer_spec(params["w2"].shape),               # FF W2
            layer_spec(params["b2"].shape),               # FF b2
            pl.BlockSpec((1, D), lambda b, l: (0, 0)),    # final norm alpha
            pl.BlockSpec((1, D), lambda b, l: (0, 0)),    # final norm bias
        ],
        out_specs=pl.BlockSpec((1, S, D), lambda b, l: (b, 0, 0)),
        scratch_shapes=[
            pltpu.VMEM((S, D), jnp.float32),              # residual stream
            pltpu.VMEM((heads, S, dk), jnp.bfloat16),     # Q (head-major)
            pltpu.VMEM((heads, S, dk), jnp.bfloat16),     # K self
            pltpu.VMEM((heads, S, dk), jnp.bfloat16),     # V self
            pltpu.VMEM((heads, Se, dk), jnp.bfloat16),    # K cross
            pltpu.VMEM((heads, Se, dk), jnp.bfloat16),    # V cross
            pltpu.VMEM((S, D), jnp.bfloat16),             # attn token-major
        ],
        compiler_params=pltpu.CompilerParams(
            dimension_semantics=("parallel", "arbitrary"),
            vmem_limit_bytes=_vmem_limit_bytes()),
    )(
        x0, eo, lab, tmb,
        params["norms_a"], params["norms_b"],
        params["wqkv1"], params["bqkv1"], params["wo1"], params["bo1"],
        params["wq2"], params["bq2"], params["wkv2"], params["bkv2"],
        params["wo2"], params["bo2"],
        params["w1"], params["b1"], params["w2"], params["b2"],
        params["fnorm_a"], params["fnorm_b"],
    )
    return out


# ----------------------------------------------------------------------------
# One-time parameter transform: fold 1/sqrt(dk) into Q projections and cast
# matmul weights to bf16 (accumulation stays f32 in-kernel).
# ----------------------------------------------------------------------------

def prepare_params(params, heads):
    D = params["embed"].shape[1]
    dk = D // heads
    scale = 1.0 / math.sqrt(dk)
    p = dict(params)
    p["wqkv1"] = params["wqkv1"].at[:, :, 0:D].multiply(scale).astype(jnp.bfloat16)
    p["bqkv1"] = params["bqkv1"].at[:, :, 0:D].multiply(scale).astype(jnp.float32)
    p["wq2"] = (params["wq2"] * scale).astype(jnp.bfloat16)
    p["bq2"] = (params["bq2"] * scale).astype(jnp.float32)
    for k in ("wo1", "wkv2", "wo2", "w1", "w2"):
        p[k] = params[k].astype(jnp.bfloat16)
    return p


# ----------------------------------------------------------------------------
# Positional encoding table (precomputed once)
# ----------------------------------------------------------------------------

def make_pe(seq_len, d_model):
    pos = jnp.arange(seq_len, dtype=jnp.float32)[:, None]
    idx = jnp.arange(0, d_model, 2, dtype=jnp.float32)[None, :]
    pe_sin = jnp.sin(pos / jnp.power(10000.0, (2.0 * idx) / d_model))
    pe_cos = jnp.cos(pos / jnp.power(10000.0, (2.0 * (idx + 1.0)) / d_model))
    return jnp.stack([pe_sin, pe_cos], axis=-1).reshape(seq_len, d_model)


# ----------------------------------------------------------------------------
# Deterministic synthetic parameter init (stacked per-layer weights, f32)
# ----------------------------------------------------------------------------

def init_params(key, vocab_size, d_model, N, heads, d_ff):
    D = d_model
    n_w = 10
    keys = jax.random.split(key, 1 + N * n_w)
    embed = jax.random.normal(keys[0], (vocab_size, D), jnp.float32) * 0.05

    def w(k, din, dout):
        return jax.random.normal(k, (din, dout), jnp.float32) * 0.05

    wqkv1, wo1, wq2, wkv2, wo2, w1, w2 = [], [], [], [], [], [], []
    for i in range(N):
        lk = keys[1 + i * n_w: 1 + (i + 1) * n_w]
        wqkv1.append(jnp.concatenate([w(lk[0], D, D), w(lk[1], D, D),
                                      w(lk[2], D, D)], axis=1))
        wo1.append(w(lk[3], D, D))
        wq2.append(w(lk[4], D, D))
        wkv2.append(jnp.concatenate([w(lk[5], D, D), w(lk[6], D, D)], axis=1))
        wo2.append(w(lk[7], D, D))
        w1.append(w(lk[8], D, d_ff))
        w2.append(w(lk[9], d_ff, D))

    return {
        "embed": embed,
        "norms_a": jnp.ones((N, 3, D), jnp.float32),
        "norms_b": jnp.zeros((N, 3, D), jnp.float32),
        "wqkv1": jnp.stack(wqkv1), "bqkv1": jnp.zeros((N, 1, 3 * D), jnp.float32),
        "wo1": jnp.stack(wo1), "bo1": jnp.zeros((N, 1, D), jnp.float32),
        "wq2": jnp.stack(wq2), "bq2": jnp.zeros((N, 1, D), jnp.float32),
        "wkv2": jnp.stack(wkv2), "bkv2": jnp.zeros((N, 1, 2 * D), jnp.float32),
        "wo2": jnp.stack(wo2), "bo2": jnp.zeros((N, 1, D), jnp.float32),
        "w1": jnp.stack(w1), "b1": jnp.zeros((N, 1, d_ff), jnp.float32),
        "w2": jnp.stack(w2), "b2": jnp.zeros((N, 1, D), jnp.float32),
        "fnorm_a": jnp.ones((1, D), jnp.float32),
        "fnorm_b": jnp.zeros((1, D), jnp.float32),
    }


# ----------------------------------------------------------------------------
# Main
# ----------------------------------------------------------------------------

if __name__ == "__main__":
    vocab_size, d_model, N, heads, d_ff = 50, 32, 2, 4, 64
    B, S = 2, 8

    key = jax.random.PRNGKey(0)
    k_params, k_trg, k_enc = jax.random.split(key, 3)

    params = init_params(k_params, vocab_size, d_model, N, heads, d_ff)
    params = prepare_params(params, heads)   # one-time: fold scale, cast bf16

    trg = jax.random.randint(k_trg, (B, S), 0, vocab_size, dtype=jnp.int32)
    e_outputs = jax.random.normal(k_enc, (B, S, d_model), jnp.float32)

    # causal mask for decoder self-attention; all-ones mask for cross-attention
    look_ahead_mask = jnp.tril(jnp.ones((S, S), jnp.float32))[None, None].repeat(B, 0)
    trg_mask = jnp.ones((B, 1, S, S), jnp.float32)

    pe = make_pe(S, d_model)   # precomputed once

    fwd = jax.jit(partial(decoder_forward, heads=heads))
    out = fwd(params, trg, e_outputs, look_ahead_mask, trg_mask, pe)
    jax.block_until_ready(out)

    assert out.shape == (B, S, d_model)
    assert jnp.all(jnp.isfinite(out))
    print("KERNEL_OK")
</pallas_src>

<mosaic_0001>
module attributes {stable_mosaic.version = 11 : i64} {
  func.func @_decoder_kernel(%arg0: i32, %arg1: i32, %arg2: memref<1x8x32xf32, #tpu.memory_space<vmem>>, %arg3: memref<1x8x32xbf16, #tpu.memory_space<vmem>>, %arg4: memref<1x8x8xf32, #tpu.memory_space<vmem>>, %arg5: memref<1x8x8xf32, #tpu.memory_space<vmem>>, %arg6: memref<1x3x32xf32, #tpu.memory_space<vmem>>, %arg7: memref<1x3x32xf32, #tpu.memory_space<vmem>>, %arg8: memref<1x32x96xbf16, #tpu.memory_space<vmem>>, %arg9: memref<1x1x96xf32, #tpu.memory_space<vmem>>, %arg10: memref<1x32x32xbf16, #tpu.memory_space<vmem>>, %arg11: memref<1x1x32xf32, #tpu.memory_space<vmem>>, %arg12: memref<1x32x32xbf16, #tpu.memory_space<vmem>>, %arg13: memref<1x1x32xf32, #tpu.memory_space<vmem>>, %arg14: memref<1x32x64xbf16, #tpu.memory_space<vmem>>, %arg15: memref<1x1x64xf32, #tpu.memory_space<vmem>>, %arg16: memref<1x32x32xbf16, #tpu.memory_space<vmem>>, %arg17: memref<1x1x32xf32, #tpu.memory_space<vmem>>, %arg18: memref<1x32x64xbf16, #tpu.memory_space<vmem>>, %arg19: memref<1x1x64xf32, #tpu.memory_space<vmem>>, %arg20: memref<1x64x32xbf16, #tpu.memory_space<vmem>>, %arg21: memref<1x1x32xf32, #tpu.memory_space<vmem>>, %arg22: memref<1x32xf32, #tpu.memory_space<vmem>>, %arg23: memref<1x32xf32, #tpu.memory_space<vmem>>, %arg24: memref<1x8x32xf32, #tpu.memory_space<vmem>>, %arg25: memref<8x32xf32, #tpu.memory_space<vmem>>, %arg26: memref<4x8x8xbf16, #tpu.memory_space<vmem>>, %arg27: memref<4x8x8xbf16, #tpu.memory_space<vmem>>, %arg28: memref<4x8x8xbf16, #tpu.memory_space<vmem>>, %arg29: memref<4x8x8xbf16, #tpu.memory_space<vmem>>, %arg30: memref<4x8x8xbf16, #tpu.memory_space<vmem>>, %arg31: memref<8x32xbf16, #tpu.memory_space<vmem>>) attributes {dimension_semantics = [#tpu.dimension_semantics<parallel>, #tpu.dimension_semantics<arbitrary>], iteration_bounds = array<i64: 2, 2>, scalar_prefetch = 0 : i64, scratch_operands = 7 : i64, tpu.core_type = #tpu.core_type<tc>, window_params = [{transform_indices = @transform_0, window_bounds = array<i64: 1, 8, 32>}, {transform_indices = @transform_1, window_bounds = array<i64: 1, 8, 32>}, {transform_indices = @transform_2, window_bounds = array<i64: 1, 8, 8>}, {transform_indices = @transform_3, window_bounds = array<i64: 1, 8, 8>}, {transform_indices = @transform_4, window_bounds = array<i64: 1, 3, 32>}, {transform_indices = @transform_5, window_bounds = array<i64: 1, 3, 32>}, {transform_indices = @transform_6, window_bounds = array<i64: 1, 32, 96>}, {transform_indices = @transform_7, window_bounds = array<i64: 1, 1, 96>}, {transform_indices = @transform_8, window_bounds = array<i64: 1, 32, 32>}, {transform_indices = @transform_9, window_bounds = array<i64: 1, 1, 32>}, {transform_indices = @transform_10, window_bounds = array<i64: 1, 32, 32>}, {transform_indices = @transform_11, window_bounds = array<i64: 1, 1, 32>}, {transform_indices = @transform_12, window_bounds = array<i64: 1, 32, 64>}, {transform_indices = @transform_13, window_bounds = array<i64: 1, 1, 64>}, {transform_indices = @transform_14, window_bounds = array<i64: 1, 32, 32>}, {transform_indices = @transform_15, window_bounds = array<i64: 1, 1, 32>}, {transform_indices = @transform_16, window_bounds = array<i64: 1, 32, 64>}, {transform_indices = @transform_17, window_bounds = array<i64: 1, 1, 64>}, {transform_indices = @transform_18, window_bounds = array<i64: 1, 64, 32>}, {transform_indices = @transform_19, window_bounds = array<i64: 1, 1, 32>}, {pipeline_mode = #tpu.pipeline_mode<synchronous>, transform_indices = @transform_20, window_bounds = array<i64: 1, 32>}, {pipeline_mode = #tpu.pipeline_mode<synchronous>, transform_indices = @transform_21, window_bounds = array<i64: 1, 32>}, {transform_indices = @transform_22, window_bounds = array<i64: 1, 8, 32>}]} {
    %c0_i32 = arith.constant 0 : i32
    %0 = arith.cmpi eq, %arg1, %c0_i32 : i32
    %1 = arith.extui %0 : i1 to i32
    %c0_i32_0 = arith.constant 0 : i32
    %2 = arith.cmpi ne, %1, %c0_i32_0 : i32
    scf.if %2 {
      %c0_196 = arith.constant 0 : index
      %c0_197 = arith.constant 0 : index
      %c0_198 = arith.constant 0 : index
      %340 = vector.load %arg2[%c0_196, %c0_197, %c0_198] : memref<1x8x32xf32, #tpu.memory_space<vmem>>, vector<1x8x32xf32>
      %341 = vector.shape_cast %340 : vector<1x8x32xf32> to vector<8x32xf32>
      %c0_199 = arith.constant 0 : index
      %c0_200 = arith.constant 0 : index
      %342 = vector.load %arg25[%c0_199, %c0_200] : memref<8x32xf32, #tpu.memory_space<vmem>>, vector<8x32xf32>
      tpu.vector_store %arg25[%c0_199, %c0_200], %341 {strides = array<i32>} : memref<8x32xf32, #tpu.memory_space<vmem>>, vector<8x32xf32>,
    } else {
    }
    %c0 = arith.constant 0 : index
    %c0_1 = arith.constant 0 : index
    %c0_2 = arith.constant 0 : index
    %3 = vector.load %arg6[%c0, %c0_1, %c0_2] : memref<1x3x32xf32, #tpu.memory_space<vmem>>, vector<1x3x32xf32>
    %4 = vector.shape_cast %3 : vector<1x3x32xf32> to vector<3x32xf32>
    %c0_3 = arith.constant 0 : index
    %c0_4 = arith.constant 0 : index
    %c0_5 = arith.constant 0 : index
    %5 = vector.load %arg7[%c0_3, %c0_4, %c0_5] : memref<1x3x32xf32, #tpu.memory_space<vmem>>, vector<1x3x32xf32>
    %6 = vector.shape_cast %5 : vector<1x3x32xf32> to vector<3x32xf32>
    %c0_6 = arith.constant 0 : index
    %c0_7 = arith.constant 0 : index
    %7 = vector.load %arg25[%c0_6, %c0_7] : memref<8x32xf32, #tpu.memory_space<vmem>>, vector<8x32xf32>
    %8 = vector.extract_strided_slice %4 {offsets = [0, 0], sizes = [1, 32], strides = [1, 1]} : vector<3x32xf32> to vector<1x32xf32>
    %9 = vector.extract_strided_slice %6 {offsets = [0, 0], sizes = [1, 32], strides = [1, 1]} : vector<3x32xf32> to vector<1x32xf32>
    %cst = arith.constant dense<0.000000e+00> : vector<8xf32>
    %10 = vector.multi_reduction <add>, %7, %cst [1] : vector<8x32xf32> to vector<8xf32>
    %11 = vector.shape_cast %10 : vector<8xf32> to vector<8x1xf32>
    %cst_8 = arith.constant 3.200000e+01 : f32
    %12 = vector.broadcast %cst_8 : f32 to vector<8x1xf32>
    %13 = arith.divf %11, %12 : vector<8x1xf32>
    %14 = vector.broadcast %13 : vector<8x1xf32> to vector<8x32xf32>
    %15 = arith.subf %7, %14 : vector<8x32xf32>
    %16 = arith.mulf %15, %15 : vector<8x32xf32>
    %cst_9 = arith.constant dense<0.000000e+00> : vector<8xf32>
    %17 = vector.multi_reduction <add>, %16, %cst_9 [1] : vector<8x32xf32> to vector<8xf32>
    %18 = vector.shape_cast %17 : vector<8xf32> to vector<8x1xf32>
    %cst_10 = arith.constant 0.0322580636 : f32
    %19 = vector.broadcast %cst_10 : f32 to vector<8x1xf32>
    %20 = arith.mulf %18, %19 : vector<8x1xf32>
    %21 = vector.broadcast %13 : vector<8x1xf32> to vector<8x32xf32>
    %22 = arith.subf %7, %21 : vector<8x32xf32>
    %23 = vector.broadcast %8 : vector<1x32xf32> to vector<8x32xf32>
    %24 = arith.mulf %23, %22 : vector<8x32xf32>
    %25 = math.sqrt %20 : vector<8x1xf32>
    %cst_11 = arith.constant 9.99999997E-7 : f32
    %26 = vector.broadcast %cst_11 : f32 to vector<8x1xf32>
    %27 = arith.addf %25, %26 : vector<8x1xf32>
    %28 = vector.broadcast %27 : vector<8x1xf32> to vector<8x32xf32>
    %29 = arith.divf %24, %28 : vector<8x32xf32>
    %30 = vector.broadcast %9 : vector<1x32xf32> to vector<8x32xf32>
    %31 = arith.addf %29, %30 : vector<8x32xf32>
    %32 = arith.truncf %31 : vector<8x32xf32> to vector<8x32xbf16>
    %c0_12 = arith.constant 0 : index
    %c0_13 = arith.constant 0 : index
    %c0_14 = arith.constant 0 : index
    %33 = vector.load %arg8[%c0_12, %c0_13, %c0_14] : memref<1x32x96xbf16, #tpu.memory_space<vmem>>, vector<1x32x96xbf16>
    %34 = vector.shape_cast %33 : vector<1x32x96xbf16> to vector<32x96xbf16>
    %cst_15 = arith.constant dense<0.000000e+00> : vector<8x96xf32>
    %35 = tpu.matmul %32, %34, %cst_15 {dimension_numbers = #tpu.dot_dimension_numbers<[1], [0], [0], [1], [0, 0, 1, 1], [], []>} : vector<8x32xbf16>, vector<32x96xbf16>, vector<8x96xf32> -> vector<8x96xf32>
    %c0_16 = arith.constant 0 : index
    %c0_17 = arith.constant 0 : index
    %c0_18 = arith.constant 0 : index
    %36 = vector.load %arg9[%c0_16, %c0_17, %c0_18] : memref<1x1x96xf32, #tpu.memory_space<vmem>>, vector<1x1x96xf32>
    %37 = vector.shape_cast %36 : vector<1x1x96xf32> to vector<1x96xf32>
    %38 = vector.broadcast %37 : vector<1x96xf32> to vector<8x96xf32>
    %39 = arith.addf %35, %38 : vector<8x96xf32>
    %40 = vector.extract_strided_slice %39 {offsets = [0, 0], sizes = [8, 8], strides = [1, 1]} : vector<8x96xf32> to vector<8x8xf32>
    %41 = arith.truncf %40 : vector<8x8xf32> to vector<8x8xbf16>
    %c0_19 = arith.constant 0 : index
    %c0_20 = arith.constant 0 : index
    %c0_21 = arith.constant 0 : index
    %42 = vector.load %arg26[%c0_19, %c0_20, %c0_21] : memref<4x8x8xbf16, #tpu.memory_space<vmem>>, vector<1x8x8xbf16>
    %43 = vector.shape_cast %42 : vector<1x8x8xbf16> to vector<8x8xbf16>
    %44 = vector.shape_cast %41 : vector<8x8xbf16> to vector<1x8x8xbf16>
    tpu.vector_store %arg26[%c0_19, %c0_20, %c0_21], %44 {strides = array<i32>} : memref<4x8x8xbf16, #tpu.memory_space<vmem>>, vector<1x8x8xbf16>,
    %45 = vector.extract_strided_slice %39 {offsets = [0, 32], sizes = [8, 8], strides = [1, 1]} : vector<8x96xf32> to vector<8x8xf32>
    %46 = arith.truncf %45 : vector<8x8xf32> to vector<8x8xbf16>
    %c0_22 = arith.constant 0 : index
    %c0_23 = arith.constant 0 : index
    %c0_24 = arith.constant 0 : index
    %47 = vector.load %arg27[%c0_22, %c0_23, %c0_24] : memref<4x8x8xbf16, #tpu.memory_space<vmem>>, vector<1x8x8xbf16>
    %48 = vector.shape_cast %47 : vector<1x8x8xbf16> to vector<8x8xbf16>
    %49 = vector.shape_cast %46 : vector<8x8xbf16> to vector<1x8x8xbf16>
    tpu.vector_store %arg27[%c0_22, %c0_23, %c0_24], %49 {strides = array<i32>} : memref<4x8x8xbf16, #tpu.memory_space<vmem>>, vector<1x8x8xbf16>,
    %50 = vector.extract_strided_slice %39 {offsets = [0, 64], sizes = [8, 8], strides = [1, 1]} : vector<8x96xf32> to vector<8x8xf32>
    %51 = arith.truncf %50 : vector<8x8xf32> to vector<8x8xbf16>
    %c0_25 = arith.constant 0 : index
    %c0_26 = arith.constant 0 : index
    %c0_27 = arith.constant 0 : index
    %52 = vector.load %arg28[%c0_25, %c0_26, %c0_27] : memref<4x8x8xbf16, #tpu.memory_space<vmem>>, vector<1x8x8xbf16>
    %53 = vector.shape_cast %52 : vector<1x8x8xbf16> to vector<8x8xbf16>
    %54 = vector.shape_cast %51 : vector<8x8xbf16> to vector<1x8x8xbf16>
    tpu.vector_store %arg28[%c0_25, %c0_26, %c0_27], %54 {strides = array<i32>} : memref<4x8x8xbf16, #tpu.memory_space<vmem>>, vector<1x8x8xbf16>,
    %55 = vector.extract_strided_slice %39 {offsets = [0, 8], sizes = [8, 8], strides = [1, 1]} : vector<8x96xf32> to vector<8x8xf32>
    %56 = arith.truncf %55 : vector<8x8xf32> to vector<8x8xbf16>
    %c1 = arith.constant 1 : index
    %c0_28 = arith.constant 0 : index
    %c0_29 = arith.constant 0 : index
    %57 = vector.load %arg26[%c1, %c0_28, %c0_29] : memref<4x8x8xbf16, #tpu.memory_space<vmem>>, vector<1x8x8xbf16>
    %58 = vector.shape_cast %57 : vector<1x8x8xbf16> to vector<8x8xbf16>
    %59 = vector.shape_cast %56 : vector<8x8xbf16> to vector<1x8x8xbf16>
    tpu.vector_store %arg26[%c1, %c0_28, %c0_29], %59 {strides = array<i32>} : memref<4x8x8xbf16, #tpu.memory_space<vmem>>, vector<1x8x8xbf16>,
    %60 = vector.extract_strided_slice %39 {offsets = [0, 40], sizes = [8, 8], strides = [1, 1]} : vector<8x96xf32> to vector<8x8xf32>
    %61 = arith.truncf %60 : vector<8x8xf32> to vector<8x8xbf16>
    %c1_30 = arith.constant 1 : index
    %c0_31 = arith.constant 0 : index
    %c0_32 = arith.constant 0 : index
    %62 = vector.load %arg27[%c1_30, %c0_31, %c0_32] : memref<4x8x8xbf16, #tpu.memory_space<vmem>>, vector<1x8x8xbf16>
    %63 = vector.shape_cast %62 : vector<1x8x8xbf16> to vector<8x8xbf16>
    %64 = vector.shape_cast %61 : vector<8x8xbf16> to vector<1x8x8xbf16>
    tpu.vector_store %arg27[%c1_30, %c0_31, %c0_32], %64 {strides = array<i32>} : memref<4x8x8xbf16, #tpu.memory_space<vmem>>, vector<1x8x8xbf16>,
    %65 = vector.extract_strided_slice %39 {offsets = [0, 72], sizes = [8, 8], strides = [1, 1]} : vector<8x96xf32> to vector<8x8xf32>
    %66 = arith.truncf %65 : vector<8x8xf32> to vector<8x8xbf16>
    %c1_33 = arith.constant 1 : index
    %c0_34 = arith.constant 0 : index
    %c0_35 = arith.constant 0 : index
    %67 = vector.load %arg28[%c1_33, %c0_34, %c0_35] : memref<4x8x8xbf16, #tpu.memory_space<vmem>>, vector<1x8x8xbf16>
    %68 = vector.shape_cast %67 : vector<1x8x8xbf16> to vector<8x8xbf16>
    %69 = vector.shape_cast %66 : vector<8x8xbf16> to vector<1x8x8xbf16>
    tpu.vector_store %arg28[%c1_33, %c0_34, %c0_35], %69 {strides = array<i32>} : memref<4x8x8xbf16, #tpu.memory_space<vmem>>, vector<1x8x8xbf16>,
    %70 = vector.extract_strided_slice %39 {offsets = [0, 16], sizes = [8, 8], strides = [1, 1]} : vector<8x96xf32> to vector<8x8xf32>
    %71 = arith.truncf %70 : vector<8x8xf32> to vector<8x8xbf16>
    %c2 = arith.constant 2 : index
    %c0_36 = arith.constant 0 : index
    %c0_37 = arith.constant 0 : index
    %72 = vector.load %arg26[%c2, %c0_36, %c0_37] : memref<4x8x8xbf16, #tpu.memory_space<vmem>>, vector<1x8x8xbf16>
    %73 = vector.shape_cast %72 : vector<1x8x8xbf16> to vector<8x8xbf16>
    %74 = vector.shape_cast %71 : vector<8x8xbf16> to vector<1x8x8xbf16>
    tpu.vector_store %arg26[%c2, %c0_36, %c0_37], %74 {strides = array<i32>} : memref<4x8x8xbf16, #tpu.memory_space<vmem>>, vector<1x8x8xbf16>,
    %75 = vector.extract_strided_slice %39 {offsets = [0, 48], sizes = [8, 8], strides = [1, 1]} : vector<8x96xf32> to vector<8x8xf32>
    %76 = arith.truncf %75 : vector<8x8xf32> to vector<8x8xbf16>
    %c2_38 = arith.constant 2 : index
    %c0_39 = arith.constant 0 : index
    %c0_40 = arith.constant 0 : index
    %77 = vector.load %arg27[%c2_38, %c0_39, %c0_40] : memref<4x8x8xbf16, #tpu.memory_space<vmem>>, vector<1x8x8xbf16>
    %78 = vector.shape_cast %77 : vector<1x8x8xbf16> to vector<8x8xbf16>
    %79 = vector.shape_cast %76 : vector<8x8xbf16> to vector<1x8x8xbf16>
    tpu.vector_store %arg27[%c2_38, %c0_39, %c0_40], %79 {strides = array<i32>} : memref<4x8x8xbf16, #tpu.memory_space<vmem>>, vector<1x8x8xbf16>,
    %80 = vector.extract_strided_slice %39 {offsets = [0, 80], sizes = [8, 8], strides = [1, 1]} : vector<8x96xf32> to vector<8x8xf32>
    %81 = arith.truncf %80 : vector<8x8xf32> to vector<8x8xbf16>
    %c2_41 = arith.constant 2 : index
    %c0_42 = arith.constant 0 : index
    %c0_43 = arith.constant 0 : index
    %82 = vector.load %arg28[%c2_41, %c0_42, %c0_43] : memref<4x8x8xbf16, #tpu.memory_space<vmem>>, vector<1x8x8xbf16>
    %83 = vector.shape_cast %82 : vector<1x8x8xbf16> to vector<8x8xbf16>
    %84 = vector.shape_cast %81 : vector<8x8xbf16> to vector<1x8x8xbf16>
    tpu.vector_store %arg28[%c2_41, %c0_42, %c0_43], %84 {strides = array<i32>} : memref<4x8x8xbf16, #tpu.memory_space<vmem>>, vector<1x8x8xbf16>,
    %85 = vector.extract_strided_slice %39 {offsets = [0, 24], sizes = [8, 8], strides = [1, 1]} : vector<8x96xf32> to vector<8x8xf32>
    %86 = arith.truncf %85 : vector<8x8xf32> to vector<8x8xbf16>
    %c3 = arith.constant 3 : index
    %c0_44 = arith.constant 0 : index
    %c0_45 = arith.constant 0 : index
    %87 = vector.load %arg26[%c3, %c0_44, %c0_45] : memref<4x8x8xbf16, #tpu.memory_space<vmem>>, vector<1x8x8xbf16>
    %88 = vector.shape_cast %87 : vector<1x8x8xbf16> to vector<8x8xbf16>
    %89 = vector.shape_cast %86 : vector<8x8xbf16> to vector<1x8x8xbf16>
    tpu.vector_store %arg26[%c3, %c0_44, %c0_45], %89 {strides = array<i32>} : memref<4x8x8xbf16, #tpu.memory_space<vmem>>, vector<1x8x8xbf16>,
    %90 = vector.extract_strided_slice %39 {offsets = [0, 56], sizes = [8, 8], strides = [1, 1]} : vector<8x96xf32> to vector<8x8xf32>
    %91 = arith.truncf %90 : vector<8x8xf32> to vector<8x8xbf16>
    %c3_46 = arith.constant 3 : index
    %c0_47 = arith.constant 0 : index
    %c0_48 = arith.constant 0 : index
    %92 = vector.load %arg27[%c3_46, %c0_47, %c0_48] : memref<4x8x8xbf16, #tpu.memory_space<vmem>>, vector<1x8x8xbf16>
    %93 = vector.shape_cast %92 : vector<1x8x8xbf16> to vector<8x8xbf16>
    %94 = vector.shape_cast %91 : vector<8x8xbf16> to vector<1x8x8xbf16>
    tpu.vector_store %arg27[%c3_46, %c0_47, %c0_48], %94 {strides = array<i32>} : memref<4x8x8xbf16, #tpu.memory_space<vmem>>, vector<1x8x8xbf16>,
    %95 = vector.extract_strided_slice %39 {offsets = [0, 88], sizes = [8, 8], strides = [1, 1]} : vector<8x96xf32> to vector<8x8xf32>
    %96 = arith.truncf %95 : vector<8x8xf32> to vector<8x8xbf16>
    %c3_49 = arith.constant 3 : index
    %c0_50 = arith.constant 0 : index
    %c0_51 = arith.constant 0 : index
    %97 = vector.load %arg28[%c3_49, %c0_50, %c0_51] : memref<4x8x8xbf16, #tpu.memory_space<vmem>>, vector<1x8x8xbf16>
    %98 = vector.shape_cast %97 : vector<1x8x8xbf16> to vector<8x8xbf16>
    %99 = vector.shape_cast %96 : vector<8x8xbf16> to vector<1x8x8xbf16>
    tpu.vector_store %arg28[%c3_49, %c0_50, %c0_51], %99 {strides = array<i32>} : memref<4x8x8xbf16, #tpu.memory_space<vmem>>, vector<1x8x8xbf16>,
    %c0_52 = arith.constant 0 : index
    %c0_53 = arith.constant 0 : index
    %c0_54 = arith.constant 0 : index
    %100 = vector.load %arg4[%c0_52, %c0_53, %c0_54] : memref<1x8x8xf32, #tpu.memory_space<vmem>>, vector<1x8x8xf32>
    %101 = vector.shape_cast %100 : vector<1x8x8xf32> to vector<8x8xf32>
    %c0_55 = arith.constant 0 : index
    %c0_56 = arith.constant 0 : index
    %c0_57 = arith.constant 0 : index
    %102 = vector.load %arg26[%c0_55, %c0_56, %c0_57] : memref<4x8x8xbf16, #tpu.memory_space<vmem>>, vector<4x8x8xbf16>
    %c0_58 = arith.constant 0 : index
    %c0_59 = arith.constant 0 : index
    %c0_60 = arith.constant 0 : index
    %103 = vector.load %arg27[%c0_58, %c0_59, %c0_60] : memref<4x8x8xbf16, #tpu.memory_space<vmem>>, vector<4x8x8xbf16>
    %c0_61 = arith.constant 0 : index
    %c0_62 = arith.constant 0 : index
    %c0_63 = arith.constant 0 : index
    %104 = vector.load %arg28[%c0_61, %c0_62, %c0_63] : memref<4x8x8xbf16, #tpu.memory_space<vmem>>, vector<4x8x8xbf16>
    "tpu.trace_start"() <{level = 10 : i32, message = "hqd,hkd->hqk"}> : () -> ()
    %cst_64 = arith.constant dense<0.000000e+00> : vector<4x8x8xf32>
    %105 = tpu.matmul %102, %103, %cst_64 {dimension_numbers = #tpu.dot_dimension_numbers<[2], [2], [1], [1], [0, 0, 0, 1, 1, 1], [0], [0]>} : vector<4x8x8xbf16>, vector<4x8x8xbf16>, vector<4x8x8xf32> -> vector<4x8x8xf32>
    "tpu.trace_stop"() : () -> ()
    %106 = vector.shape_cast %101 : vector<8x8xf32> to vector<1x8x8xf32>
    %107 = vector.broadcast %106 : vector<1x8x8xf32> to vector<4x8x8xf32>
    %108 = arith.addf %105, %107 : vector<4x8x8xf32>
    %cst_65 = arith.constant dense<0xFF800000> : vector<4x8xf32>
    %109 = vector.multi_reduction <maximumf>, %108, %cst_65 [2] : vector<4x8x8xf32> to vector<4x8xf32>
    %110 = vector.shape_cast %109 : vector<4x8xf32> to vector<4x8x1xf32>
    %111 = vector.broadcast %110 : vector<4x8x1xf32> to vector<4x8x8xf32>
    %112 = arith.subf %108, %111 : vector<4x8x8xf32>
    %113 = math.exp %112 : vector<4x8x8xf32>
    %cst_66 = arith.constant dense<0.000000e+00> : vector<4x8xf32>
    %114 = vector.multi_reduction <add>, %113, %cst_66 [2] : vector<4x8x8xf32> to vector<4x8xf32>
    %115 = vector.shape_cast %114 : vector<4x8xf32> to vector<4x8x1xf32>
    %116 = tpu.reciprocal %115 {approx = true} : vector<4x8x1xf32> -> vector<4x8x1xf32>
    %117 = vector.broadcast %116 : vector<4x8x1xf32> to vector<4x8x8xf32>
    %118 = arith.mulf %113, %117 : vector<4x8x8xf32>
    %119 = arith.truncf %118 : vector<4x8x8xf32> to vector<4x8x8xbf16>
    "tpu.trace_start"() <{level = 10 : i32, message = "hqk,hkd->hqd"}> : () -> ()
    %cst_67 = arith.constant dense<0.000000e+00> : vector<4x8x8xf32>
    %120 = tpu.matmul %119, %104, %cst_67 {dimension_numbers = #tpu.dot_dimension_numbers<[2], [1], [1], [2], [0, 0, 0, 1, 1, 2], [0], [0]>} : vector<4x8x8xbf16>, vector<4x8x8xbf16>, vector<4x8x8xf32> -> vector<4x8x8xf32>
    "tpu.trace_stop"() : () -> ()
    %121 = vector.extract_strided_slice %120 {offsets = [0, 0, 0], sizes = [1, 8, 8], strides = [1, 1, 1]} : vector<4x8x8xf32> to vector<1x8x8xf32>
    %122 = vector.shape_cast %121 : vector<1x8x8xf32> to vector<8x8xf32>
    %123 = arith.truncf %122 : vector<8x8xf32> to vector<8x8xbf16>
    %c0_68 = arith.constant 0 : index
    %c0_69 = arith.constant 0 : index
    %124 = vector.load %arg31[%c0_68, %c0_69] : memref<8x32xbf16, #tpu.memory_space<vmem>>, vector<8x8xbf16>
    tpu.vector_store %arg31[%c0_68, %c0_69], %123 {strides = array<i32>} : memref<8x32xbf16, #tpu.memory_space<vmem>>, vector<8x8xbf16>,
    %125 = vector.extract_strided_slice %120 {offsets = [1, 0, 0], sizes = [1, 8, 8], strides = [1, 1, 1]} : vector<4x8x8xf32> to vector<1x8x8xf32>
    %126 = vector.shape_cast %125 : vector<1x8x8xf32> to vector<8x8xf32>
    %127 = arith.truncf %126 : vector<8x8xf32> to vector<8x8xbf16>
    %c0_70 = arith.constant 0 : index
    %c8 = arith.constant 8 : index
    %128 = vector.load %arg31[%c0_70, %c8] : memref<8x32xbf16, #tpu.memory_space<vmem>>, vector<8x8xbf16>
    tpu.vector_store %arg31[%c0_70, %c8], %127 {strides = array<i32>} : memref<8x32xbf16, #tpu.memory_space<vmem>>, vector<8x8xbf16>,
    %129 = vector.extract_strided_slice %120 {offsets = [2, 0, 0], sizes = [1, 8, 8], strides = [1, 1, 1]} : vector<4x8x8xf32> to vector<1x8x8xf32>
    %130 = vector.shape_cast %129 : vector<1x8x8xf32> to vector<8x8xf32>
    %131 = arith.truncf %130 : vector<8x8xf32> to vector<8x8xbf16>
    %c0_71 = arith.constant 0 : index
    %c16 = arith.constant 16 : index
    %132 = vector.load %arg31[%c0_71, %c16] : memref<8x32xbf16, #tpu.memory_space<vmem>>, vector<8x8xbf16>
    tpu.vector_store %arg31[%c0_71, %c16], %131 {strides = array<i32>} : memref<8x32xbf16, #tpu.memory_space<vmem>>, vector<8x8xbf16>,
    %133 = vector.extract_strided_slice %120 {offsets = [3, 0, 0], sizes = [1, 8, 8], strides = [1, 1, 1]} : vector<4x8x8xf32> to vector<1x8x8xf32>
    %134 = vector.shape_cast %133 : vector<1x8x8xf32> to vector<8x8xf32>
    %135 = arith.truncf %134 : vector<8x8xf32> to vector<8x8xbf16>
    %c0_72 = arith.constant 0 : index
    %c24 = arith.constant 24 : index
    %136 = vector.load %arg31[%c0_72, %c24] : memref<8x32xbf16, #tpu.memory_space<vmem>>, vector<8x8xbf16>
    tpu.vector_store %arg31[%c0_72, %c24], %135 {strides = array<i32>} : memref<8x32xbf16, #tpu.memory_space<vmem>>, vector<8x8xbf16>,
    %c0_73 = arith.constant 0 : index
    %c0_74 = arith.constant 0 : index
    %137 = vector.load %arg31[%c0_73, %c0_74] : memref<8x32xbf16, #tpu.memory_space<vmem>>, vector<8x32xbf16>
    %c0_75 = arith.constant 0 : index
    %c0_76 = arith.constant 0 : index
    %c0_77 = arith.constant 0 : index
    %138 = vector.load %arg10[%c0_75, %c0_76, %c0_77] : memref<1x32x32xbf16, #tpu.memory_space<vmem>>, vector<1x32x32xbf16>
    %139 = vector.shape_cast %138 : vector<1x32x32xbf16> to vector<32x32xbf16>
    %cst_78 = arith.constant dense<0.000000e+00> : vector<8x32xf32>
    %140 = tpu.matmul %137, %139, %cst_78 {dimension_numbers = #tpu.dot_dimension_numbers<[1], [0], [0], [1], [0, 0, 1, 1], [], []>} : vector<8x32xbf16>, vector<32x32xbf16>, vector<8x32xf32> -> vector<8x32xf32>
    %141 = arith.addf %7, %140 : vector<8x32xf32>
    %c0_79 = arith.constant 0 : index
    %c0_80 = arith.constant 0 : index
    %c0_81 = arith.constant 0 : index
    %142 = vector.load %arg11[%c0_79, %c0_80, %c0_81] : memref<1x1x32xf32, #tpu.memory_space<vmem>>, vector<1x1x32xf32>
    %143 = vector.shape_cast %142 : vector<1x1x32xf32> to vector<1x32xf32>
    %144 = vector.broadcast %143 : vector<1x32xf32> to vector<8x32xf32>
    %145 = arith.addf %141, %144 : vector<8x32xf32>
    %146 = vector.extract_strided_slice %4 {offsets = [1, 0], sizes = [1, 32], strides = [1, 1]} : vector<3x32xf32> to vector<1x32xf32>
    %147 = vector.extract_strided_slice %6 {offsets = [1, 0], sizes = [1, 32], strides = [1, 1]} : vector<3x32xf32> to vector<1x32xf32>
    %cst_82 = arith.constant dense<0.000000e+00> : vector<8xf32>
    %148 = vector.multi_reduction <add>, %145, %cst_82 [1] : vector<8x32xf32> to vector<8xf32>
    %149 = vector.shape_cast %148 : vector<8xf32> to vector<8x1xf32>
    %cst_83 = arith.constant 3.200000e+01 : f32
    %150 = vector.broadcast %cst_83 : f32 to vector<8x1xf32>
    %151 = arith.divf %149, %150 : vector<8x1xf32>
    %152 = vector.broadcast %151 : vector<8x1xf32> to vector<8x32xf32>
    %153 = arith.subf %145, %152 : vector<8x32xf32>
    %154 = arith.mulf %153, %153 : vector<8x32xf32>
    %cst_84 = arith.constant dense<0.000000e+00> : vector<8xf32>
    %155 = vector.multi_reduction <add>, %154, %cst_84 [1] : vector<8x32xf32> to vector<8xf32>
    %156 = vector.shape_cast %155 : vector<8xf32> to vector<8x1xf32>
    %cst_85 = arith.constant 0.0322580636 : f32
    %157 = vector.broadcast %cst_85 : f32 to vector<8x1xf32>
    %158 = arith.mulf %156, %157 : vector<8x1xf32>
    %159 = vector.broadcast %151 : vector<8x1xf32> to vector<8x32xf32>
    %160 = arith.subf %145, %159 : vector<8x32xf32>
    %161 = vector.broadcast %146 : vector<1x32xf32> to vector<8x32xf32>
    %162 = arith.mulf %161, %160 : vector<8x32xf32>
    %163 = math.sqrt %158 : vector<8x1xf32>
    %cst_86 = arith.constant 9.99999997E-7 : f32
    %164 = vector.broadcast %cst_86 : f32 to vector<8x1xf32>
    %165 = arith.addf %163, %164 : vector<8x1xf32>
    %166 = vector.broadcast %165 : vector<8x1xf32> to vector<8x32xf32>
    %167 = arith.divf %162, %166 : vector<8x32xf32>
    %168 = vector.broadcast %147 : vector<1x32xf32> to vector<8x32xf32>
    %169 = arith.addf %167, %168 : vector<8x32xf32>
    %170 = arith.truncf %169 : vector<8x32xf32> to vector<8x32xbf16>
    %c0_87 = arith.constant 0 : index
    %c0_88 = arith.constant 0 : index
    %c0_89 = arith.constant 0 : index
    %171 = vector.load %arg12[%c0_87, %c0_88, %c0_89] : memref<1x32x32xbf16, #tpu.memory_space<vmem>>, vector<1x32x32xbf16>
    %172 = vector.shape_cast %171 : vector<1x32x32xbf16> to vector<32x32xbf16>
    %cst_90 = arith.constant dense<0.000000e+00> : vector<8x32xf32>
    %173 = tpu.matmul %170, %172, %cst_90 {dimension_numbers = #tpu.dot_dimension_numbers<[1], [0], [0], [1], [0, 0, 1, 1], [], []>} : vector<8x32xbf16>, vector<32x32xbf16>, vector<8x32xf32> -> vector<8x32xf32>
    %c0_91 = arith.constant 0 : index
    %c0_92 = arith.constant 0 : index
    %c0_93 = arith.constant 0 : index
    %174 = vector.load %arg13[%c0_91, %c0_92, %c0_93] : memref<1x1x32xf32, #tpu.memory_space<vmem>>, vector<1x1x32xf32>
    %175 = vector.shape_cast %174 : vector<1x1x32xf32> to vector<1x32xf32>
    %176 = vector.broadcast %175 : vector<1x32xf32> to vector<8x32xf32>
    %177 = arith.addf %173, %176 : vector<8x32xf32>
    %c0_94 = arith.constant 0 : index
    %c0_95 = arith.constant 0 : index
    %c0_96 = arith.constant 0 : index
    %178 = vector.load %arg3[%c0_94, %c0_95, %c0_96] : memref<1x8x32xbf16, #tpu.memory_space<vmem>>, vector<1x8x32xbf16>
    %179 = vector.shape_cast %178 : vector<1x8x32xbf16> to vector<8x32xbf16>
    %c0_97 = arith.constant 0 : index
    %c0_98 = arith.constant 0 : index
    %c0_99 = arith.constant 0 : index
    %180 = vector.load %arg14[%c0_97, %c0_98, %c0_99] : memref<1x32x64xbf16, #tpu.memory_space<vmem>>, vector<1x32x64xbf16>
    %181 = vector.shape_cast %180 : vector<1x32x64xbf16> to vector<32x64xbf16>
    %cst_100 = arith.constant dense<0.000000e+00> : vector<8x64xf32>
    %182 = tpu.matmul %179, %181, %cst_100 {dimension_numbers = #tpu.dot_dimension_numbers<[1], [0], [0], [1], [0, 0, 1, 1], [], []>} : vector<8x32xbf16>, vector<32x64xbf16>, vector<8x64xf32> -> vector<8x64xf32>
    %c0_101 = arith.constant 0 : index
    %c0_102 = arith.constant 0 : index
    %c0_103 = arith.constant 0 : index
    %183 = vector.load %arg15[%c0_101, %c0_102, %c0_103] : memref<1x1x64xf32, #tpu.memory_space<vmem>>, vector<1x1x64xf32>
    %184 = vector.shape_cast %183 : vector<1x1x64xf32> to vector<1x64xf32>
    %185 = vector.broadcast %184 : vector<1x64xf32> to vector<8x64xf32>
    %186 = arith.addf %182, %185 : vector<8x64xf32>
    %187 = vector.extract_strided_slice %177 {offsets = [0, 0], sizes = [8, 8], strides = [1, 1]} : vector<8x32xf32> to vector<8x8xf32>
    %188 = arith.truncf %187 : vector<8x8xf32> to vector<8x8xbf16>
    %c0_104 = arith.constant 0 : index
    %c0_105 = arith.constant 0 : index
    %c0_106 = arith.constant 0 : index
    %189 = vector.load %arg26[%c0_104, %c0_105, %c0_106] : memref<4x8x8xbf16, #tpu.memory_space<vmem>>, vector<1x8x8xbf16>
    %190 = vector.shape_cast %189 : vector<1x8x8xbf16> to vector<8x8xbf16>
    %191 = vector.shape_cast %188 : vector<8x8xbf16> to vector<1x8x8xbf16>
    tpu.vector_store %arg26[%c0_104, %c0_105, %c0_106], %191 {strides = array<i32>} : memref<4x8x8xbf16, #tpu.memory_space<vmem>>, vector<1x8x8xbf16>,
    %192 = vector.extract_strided_slice %186 {offsets = [0, 0], sizes = [8, 8], strides = [1, 1]} : vector<8x64xf32> to vector<8x8xf32>
    %193 = arith.truncf %192 : vector<8x8xf32> to vector<8x8xbf16>
    %c0_107 = arith.constant 0 : index
    %c0_108 = arith.constant 0 : index
    %c0_109 = arith.constant 0 : index
    %194 = vector.load %arg29[%c0_107, %c0_108, %c0_109] : memref<4x8x8xbf16, #tpu.memory_space<vmem>>, vector<1x8x8xbf16>
    %195 = vector.shape_cast %194 : vector<1x8x8xbf16> to vector<8x8xbf16>
    %196 = vector.shape_cast %193 : vector<8x8xbf16> to vector<1x8x8xbf16>
    tpu.vector_store %arg29[%c0_107, %c0_108, %c0_109], %196 {strides = array<i32>} : memref<4x8x8xbf16, #tpu.memory_space<vmem>>, vector<1x8x8xbf16>,
    %197 = vector.extract_strided_slice %186 {offsets = [0, 32], sizes = [8, 8], strides = [1, 1]} : vector<8x64xf32> to vector<8x8xf32>
    %198 = arith.truncf %197 : vector<8x8xf32> to vector<8x8xbf16>
    %c0_110 = arith.constant 0 : index
    %c0_111 = arith.constant 0 : index
    %c0_112 = arith.constant 0 : index
    %199 = vector.load %arg30[%c0_110, %c0_111, %c0_112] : memref<4x8x8xbf16, #tpu.memory_space<vmem>>, vector<1x8x8xbf16>
    %200 = vector.shape_cast %199 : vector<1x8x8xbf16> to vector<8x8xbf16>
    %201 = vector.shape_cast %198 : vector<8x8xbf16> to vector<1x8x8xbf16>
    tpu.vector_store %arg30[%c0_110, %c0_111, %c0_112], %201 {strides = array<i32>} : memref<4x8x8xbf16, #tpu.memory_space<vmem>>, vector<1x8x8xbf16>,
    %202 = vector.extract_strided_slice %177 {offsets = [0, 8], sizes = [8, 8], strides = [1, 1]} : vector<8x32xf32> to vector<8x8xf32>
    %203 = arith.truncf %202 : vector<8x8xf32> to vector<8x8xbf16>
    %c1_113 = arith.constant 1 : index
    %c0_114 = arith.constant 0 : index
    %c0_115 = arith.constant 0 : index
    %204 = vector.load %arg26[%c1_113, %c0_114, %c0_115] : memref<4x8x8xbf16, #tpu.memory_space<vmem>>, vector<1x8x8xbf16>
    %205 = vector.shape_cast %204 : vector<1x8x8xbf16> to vector<8x8xbf16>
    %206 = vector.shape_cast %203 : vector<8x8xbf16> to vector<1x8x8xbf16>
    tpu.vector_store %arg26[%c1_113, %c0_114, %c0_115], %206 {strides = array<i32>} : memref<4x8x8xbf16, #tpu.memory_space<vmem>>, vector<1x8x8xbf16>,
    %207 = vector.extract_strided_slice %186 {offsets = [0, 8], sizes = [8, 8], strides = [1, 1]} : vector<8x64xf32> to vector<8x8xf32>
    %208 = arith.truncf %207 : vector<8x8xf32> to vector<8x8xbf16>
    %c1_116 = arith.constant 1 : index
    %c0_117 = arith.constant 0 : index
    %c0_118 = arith.constant 0 : index
    %209 = vector.load %arg29[%c1_116, %c0_117, %c0_118] : memref<4x8x8xbf16, #tpu.memory_space<vmem>>, vector<1x8x8xbf16>
    %210 = vector.shape_cast %209 : vector<1x8x8xbf16> to vector<8x8xbf16>
    %211 = vector.shape_cast %208 : vector<8x8xbf16> to vector<1x8x8xbf16>
    tpu.vector_store %arg29[%c1_116, %c0_117, %c0_118], %211 {strides = array<i32>} : memref<4x8x8xbf16, #tpu.memory_space<vmem>>, vector<1x8x8xbf16>,
    %212 = vector.extract_strided_slice %186 {offsets = [0, 40], sizes = [8, 8], strides = [1, 1]} : vector<8x64xf32> to vector<8x8xf32>
    %213 = arith.truncf %212 : vector<8x8xf32> to vector<8x8xbf16>
    %c1_119 = arith.constant 1 : index
    %c0_120 = arith.constant 0 : index
    %c0_121 = arith.constant 0 : index
    %214 = vector.load %arg30[%c1_119, %c0_120, %c0_121] : memref<4x8x8xbf16, #tpu.memory_space<vmem>>, vector<1x8x8xbf16>
    %215 = vector.shape_cast %214 : vector<1x8x8xbf16> to vector<8x8xbf16>
    %216 = vector.shape_cast %213 : vector<8x8xbf16> to vector<1x8x8xbf16>
    tpu.vector_store %arg30[%c1_119, %c0_120, %c0_121], %216 {strides = array<i32>} : memref<4x8x8xbf16, #tpu.memory_space<vmem>>, vector<1x8x8xbf16>,
    %217 = vector.extract_strided_slice %177 {offsets = [0, 16], sizes = [8, 8], strides = [1, 1]} : vector<8x32xf32> to vector<8x8xf32>
    %218 = arith.truncf %217 : vector<8x8xf32> to vector<8x8xbf16>
    %c2_122 = arith.constant 2 : index
    %c0_123 = arith.constant 0 : index
    %c0_124 = arith.constant 0 : index
    %219 = vector.load %arg26[%c2_122, %c0_123, %c0_124] : memref<4x8x8xbf16, #tpu.memory_space<vmem>>, vector<1x8x8xbf16>
    %220 = vector.shape_cast %219 : vector<1x8x8xbf16> to vector<8x8xbf16>
    %221 = vector.shape_cast %218 : vector<8x8xbf16> to vector<1x8x8xbf16>
    tpu.vector_store %arg26[%c2_122, %c0_123, %c0_124], %221 {strides = array<i32>} : memref<4x8x8xbf16, #tpu.memory_space<vmem>>, vector<1x8x8xbf16>,
    %222 = vector.extract_strided_slice %186 {offsets = [0, 16], sizes = [8, 8], strides = [1, 1]} : vector<8x64xf32> to vector<8x8xf32>
    %223 = arith.truncf %222 : vector<8x8xf32> to vector<8x8xbf16>
    %c2_125 = arith.constant 2 : index
    %c0_126 = arith.constant 0 : index
    %c0_127 = arith.constant 0 : index
    %224 = vector.load %arg29[%c2_125, %c0_126, %c0_127] : memref<4x8x8xbf16, #tpu.memory_space<vmem>>, vector<1x8x8xbf16>
    %225 = vector.shape_cast %224 : vector<1x8x8xbf16> to vector<8x8xbf16>
    %226 = vector.shape_cast %223 : vector<8x8xbf16> to vector<1x8x8xbf16>
    tpu.vector_store %arg29[%c2_125, %c0_126, %c0_127], %226 {strides = array<i32>} : memref<4x8x8xbf16, #tpu.memory_space<vmem>>, vector<1x8x8xbf16>,
    %227 = vector.extract_strided_slice %186 {offsets = [0, 48], sizes = [8, 8], strides = [1, 1]} : vector<8x64xf32> to vector<8x8xf32>
    %228 = arith.truncf %227 : vector<8x8xf32> to vector<8x8xbf16>
    %c2_128 = arith.constant 2 : index
    %c0_129 = arith.constant 0 : index
    %c0_130 = arith.constant 0 : index
    %229 = vector.load %arg30[%c2_128, %c0_129, %c0_130] : memref<4x8x8xbf16, #tpu.memory_space<vmem>>, vector<1x8x8xbf16>
    %230 = vector.shape_cast %229 : vector<1x8x8xbf16> to vector<8x8xbf16>
    %231 = vector.shape_cast %228 : vector<8x8xbf16> to vector<1x8x8xbf16>
    tpu.vector_store %arg30[%c2_128, %c0_129, %c0_130], %231 {strides = array<i32>} : memref<4x8x8xbf16, #tpu.memory_space<vmem>>, vector<1x8x8xbf16>,
    %232 = vector.extract_strided_slice %177 {offsets = [0, 24], sizes = [8, 8], strides = [1, 1]} : vector<8x32xf32> to vector<8x8xf32>
    %233 = arith.truncf %232 : vector<8x8xf32> to vector<8x8xbf16>
    %c3_131 = arith.constant 3 : index
    %c0_132 = arith.constant 0 : index
    %c0_133 = arith.constant 0 : index
    %234 = vector.load %arg26[%c3_131, %c0_132, %c0_133] : memref<4x8x8xbf16, #tpu.memory_space<vmem>>, vector<1x8x8xbf16>
    %235 = vector.shape_cast %234 : vector<1x8x8xbf16> to vector<8x8xbf16>
    %236 = vector.shape_cast %233 : vector<8x8xbf16> to vector<1x8x8xbf16>
    tpu.vector_store %arg26[%c3_131, %c0_132, %c0_133], %236 {strides = array<i32>} : memref<4x8x8xbf16, #tpu.memory_space<vmem>>, vector<1x8x8xbf16>,
    %237 = vector.extract_strided_slice %186 {offsets = [0, 24], sizes = [8, 8], strides = [1, 1]} : vector<8x64xf32> to vector<8x8xf32>
    %238 = arith.truncf %237 : vector<8x8xf32> to vector<8x8xbf16>
    %c3_134 = arith.constant 3 : index
    %c0_135 = arith.constant 0 : index
    %c0_136 = arith.constant 0 : index
    %239 = vector.load %arg29[%c3_134, %c0_135, %c0_136] : memref<4x8x8xbf16, #tpu.memory_space<vmem>>, vector<1x8x8xbf16>
    %240 = vector.shape_cast %239 : vector<1x8x8xbf16> to vector<8x8xbf16>
    %241 = vector.shape_cast %238 : vector<8x8xbf16> to vector<1x8x8xbf16>
    tpu.vector_store %arg29[%c3_134, %c0_135, %c0_136], %241 {strides = array<i32>} : memref<4x8x8xbf16, #tpu.memory_space<vmem>>, vector<1x8x8xbf16>,
    %242 = vector.extract_strided_slice %186 {offsets = [0, 56], sizes = [8, 8], strides = [1, 1]} : vector<8x64xf32> to vector<8x8xf32>
    %243 = arith.truncf %242 : vector<8x8xf32> to vector<8x8xbf16>
    %c3_137 = arith.constant 3 : index
    %c0_138 = arith.constant 0 : index
    %c0_139 = arith.constant 0 : index
    %244 = vector.load %arg30[%c3_137, %c0_138, %c0_139] : memref<4x8x8xbf16, #tpu.memory_space<vmem>>, vector<1x8x8xbf16>
    %245 = vector.shape_cast %244 : vector<1x8x8xbf16> to vector<8x8xbf16>
    %246 = vector.shape_cast %243 : vector<8x8xbf16> to vector<1x8x8xbf16>
    tpu.vector_store %arg30[%c3_137, %c0_138, %c0_139], %246 {strides = array<i32>} : memref<4x8x8xbf16, #tpu.memory_space<vmem>>, vector<1x8x8xbf16>,
    %c0_140 = arith.constant 0 : index
    %c0_141 = arith.constant 0 : index
    %c0_142 = arith.constant 0 : index
    %247 = vector.load %arg5[%c0_140, %c0_141, %c0_142] : memref<1x8x8xf32, #tpu.memory_space<vmem>>, vector<1x8x8xf32>
    %248 = vector.shape_cast %247 : vector<1x8x8xf32> to vector<8x8xf32>
    %c0_143 = arith.constant 0 : index
    %c0_144 = arith.constant 0 : index
    %c0_145 = arith.constant 0 : index
    %249 = vector.load %arg26[%c0_143, %c0_144, %c0_145] : memref<4x8x8xbf16, #tpu.memory_space<vmem>>, vector<4x8x8xbf16>
    %c0_146 = arith.constant 0 : index
    %c0_147 = arith.constant 0 : index
    %c0_148 = arith.constant 0 : index
    %250 = vector.load %arg29[%c0_146, %c0_147, %c0_148] : memref<4x8x8xbf16, #tpu.memory_space<vmem>>, vector<4x8x8xbf16>
    %c0_149 = arith.constant 0 : index
    %c0_150 = arith.constant 0 : index
    %c0_151 = arith.constant 0 : index
    %251 = vector.load %arg30[%c0_149, %c0_150, %c0_151] : memref<4x8x8xbf16, #tpu.memory_space<vmem>>, vector<4x8x8xbf16>
    "tpu.trace_start"() <{level = 10 : i32, message = "hqd,hkd->hqk"}> : () -> ()
    %cst_152 = arith.constant dense<0.000000e+00> : vector<4x8x8xf32>
    %252 = tpu.matmul %249, %250, %cst_152 {dimension_numbers = #tpu.dot_dimension_numbers<[2], [2], [1], [1], [0, 0, 0, 1, 1, 1], [0], [0]>} : vector<4x8x8xbf16>, vector<4x8x8xbf16>, vector<4x8x8xf32> -> vector<4x8x8xf32>
    "tpu.trace_stop"() : () -> ()
    %253 = vector.shape_cast %248 : vector<8x8xf32> to vector<1x8x8xf32>
    %254 = vector.broadcast %253 : vector<1x8x8xf32> to vector<4x8x8xf32>
    %255 = arith.addf %252, %254 : vector<4x8x8xf32>
    %cst_153 = arith.constant dense<0xFF800000> : vector<4x8xf32>
    %256 = vector.multi_reduction <maximumf>, %255, %cst_153 [2] : vector<4x8x8xf32> to vector<4x8xf32>
    %257 = vector.shape_cast %256 : vector<4x8xf32> to vector<4x8x1xf32>
    %258 = vector.broadcast %257 : vector<4x8x1xf32> to vector<4x8x8xf32>
    %259 = arith.subf %255, %258 : vector<4x8x8xf32>
    %260 = math.exp %259 : vector<4x8x8xf32>
    %cst_154 = arith.constant dense<0.000000e+00> : vector<4x8xf32>
    %261 = vector.multi_reduction <add>, %260, %cst_154 [2] : vector<4x8x8xf32> to vector<4x8xf32>
    %262 = vector.shape_cast %261 : vector<4x8xf32> to vector<4x8x1xf32>
    %263 = tpu.reciprocal %262 {approx = true} : vector<4x8x1xf32> -> vector<4x8x1xf32>
    %264 = vector.broadcast %263 : vector<4x8x1xf32> to vector<4x8x8xf32>
    %265 = arith.mulf %260, %264 : vector<4x8x8xf32>
    %266 = arith.truncf %265 : vector<4x8x8xf32> to vector<4x8x8xbf16>
    "tpu.trace_start"() <{level = 10 : i32, message = "hqk,hkd->hqd"}> : () -> ()
    %cst_155 = arith.constant dense<0.000000e+00> : vector<4x8x8xf32>
    %267 = tpu.matmul %266, %251, %cst_155 {dimension_numbers = #tpu.dot_dimension_numbers<[2], [1], [1], [2], [0, 0, 0, 1, 1, 2], [0], [0]>} : vector<4x8x8xbf16>, vector<4x8x8xbf16>, vector<4x8x8xf32> -> vector<4x8x8xf32>
    "tpu.trace_stop"() : () -> ()
    %268 = vector.extract_strided_slice %267 {offsets = [0, 0, 0], sizes = [1, 8, 8], strides = [1, 1, 1]} : vector<4x8x8xf32> to vector<1x8x8xf32>
    %269 = vector.shape_cast %268 : vector<1x8x8xf32> to vector<8x8xf32>
    %270 = arith.truncf %269 : vector<8x8xf32> to vector<8x8xbf16>
    %c0_156 = arith.constant 0 : index
    %c0_157 = arith.constant 0 : index
    %271 = vector.load %arg31[%c0_156, %c0_157] : memref<8x32xbf16, #tpu.memory_space<vmem>>, vector<8x8xbf16>
    tpu.vector_store %arg31[%c0_156, %c0_157], %270 {strides = array<i32>} : memref<8x32xbf16, #tpu.memory_space<vmem>>, vector<8x8xbf16>,
    %272 = vector.extract_strided_slice %267 {offsets = [1, 0, 0], sizes = [1, 8, 8], strides = [1, 1, 1]} : vector<4x8x8xf32> to vector<1x8x8xf32>
    %273 = vector.shape_cast %272 : vector<1x8x8xf32> to vector<8x8xf32>
    %274 = arith.truncf %273 : vector<8x8xf32> to vector<8x8xbf16>
    %c0_158 = arith.constant 0 : index
    %c8_159 = arith.constant 8 : index
    %275 = vector.load %arg31[%c0_158, %c8_159] : memref<8x32xbf16, #tpu.memory_space<vmem>>, vector<8x8xbf16>
    tpu.vector_store %arg31[%c0_158, %c8_159], %274 {strides = array<i32>} : memref<8x32xbf16, #tpu.memory_space<vmem>>, vector<8x8xbf16>,
    %276 = vector.extract_strided_slice %267 {offsets = [2, 0, 0], sizes = [1, 8, 8], strides = [1, 1, 1]} : vector<4x8x8xf32> to vector<1x8x8xf32>
    %277 = vector.shape_cast %276 : vector<1x8x8xf32> to vector<8x8xf32>
    %278 = arith.truncf %277 : vector<8x8xf32> to vector<8x8xbf16>
    %c0_160 = arith.constant 0 : index
    %c16_161 = arith.constant 16 : index
    %279 = vector.load %arg31[%c0_160, %c16_161] : memref<8x32xbf16, #tpu.memory_space<vmem>>, vector<8x8xbf16>
    tpu.vector_store %arg31[%c0_160, %c16_161], %278 {strides = array<i32>} : memref<8x32xbf16, #tpu.memory_space<vmem>>, vector<8x8xbf16>,
    %280 = vector.extract_strided_slice %267 {offsets = [3, 0, 0], sizes = [1, 8, 8], strides = [1, 1, 1]} : vector<4x8x8xf32> to vector<1x8x8xf32>
    %281 = vector.shape_cast %280 : vector<1x8x8xf32> to vector<8x8xf32>
    %282 = arith.truncf %281 : vector<8x8xf32> to vector<8x8xbf16>
    %c0_162 = arith.constant 0 : index
    %c24_163 = arith.constant 24 : index
    %283 = vector.load %arg31[%c0_162, %c24_163] : memref<8x32xbf16, #tpu.memory_space<vmem>>, vector<8x8xbf16>
    tpu.vector_store %arg31[%c0_162, %c24_163], %282 {strides = array<i32>} : memref<8x32xbf16, #tpu.memory_space<vmem>>, vector<8x8xbf16>,
    %c0_164 = arith.constant 0 : index
    %c0_165 = arith.constant 0 : index
    %284 = vector.load %arg31[%c0_164, %c0_165] : memref<8x32xbf16, #tpu.memory_space<vmem>>, vector<8x32xbf16>
    %c0_166 = arith.constant 0 : index
    %c0_167 = arith.constant 0 : index
    %c0_168 = arith.constant 0 : index
    %285 = vector.load %arg16[%c0_166, %c0_167, %c0_168] : memref<1x32x32xbf16, #tpu.memory_space<vmem>>, vector<1x32x32xbf16>
    %286 = vector.shape_cast %285 : vector<1x32x32xbf16> to vector<32x32xbf16>
    %cst_169 = arith.constant dense<0.000000e+00> : vector<8x32xf32>
    %287 = tpu.matmul %284, %286, %cst_169 {dimension_numbers = #tpu.dot_dimension_numbers<[1], [0], [0], [1], [0, 0, 1, 1], [], []>} : vector<8x32xbf16>, vector<32x32xbf16>, vector<8x32xf32> -> vector<8x32xf32>
    %288 = arith.addf %145, %287 : vector<8x32xf32>
    %c0_170 = arith.constant 0 : index
    %c0_171 = arith.constant 0 : index
    %c0_172 = arith.constant 0 : index
    %289 = vector.load %arg17[%c0_170, %c0_171, %c0_172] : memref<1x1x32xf32, #tpu.memory_space<vmem>>, vector<1x1x32xf32>
    %290 = vector.shape_cast %289 : vector<1x1x32xf32> to vector<1x32xf32>
    %291 = vector.broadcast %290 : vector<1x32xf32> to vector<8x32xf32>
    %292 = arith.addf %288, %291 : vector<8x32xf32>
    %293 = vector.extract_strided_slice %4 {offsets = [2, 0], sizes = [1, 32], strides = [1, 1]} : vector<3x32xf32> to vector<1x32xf32>
    %294 = vector.extract_strided_slice %6 {offsets = [2, 0], sizes = [1, 32], strides = [1, 1]} : vector<3x32xf32> to vector<1x32xf32>
    %cst_173 = arith.constant dense<0.000000e+00> : vector<8xf32>
    %295 = vector.multi_reduction <add>, %292, %cst_173 [1] : vector<8x32xf32> to vector<8xf32>
    %296 = vector.shape_cast %295 : vector<8xf32> to vector<8x1xf32>
    %cst_174 = arith.constant 3.200000e+01 : f32
    %297 = vector.broadcast %cst_174 : f32 to vector<8x1xf32>
    %298 = arith.divf %296, %297 : vector<8x1xf32>
    %299 = vector.broadcast %298 : vector<8x1xf32> to vector<8x32xf32>
    %300 = arith.subf %292, %299 : vector<8x32xf32>
    %301 = arith.mulf %300, %300 : vector<8x32xf32>
    %cst_175 = arith.constant dense<0.000000e+00> : vector<8xf32>
    %302 = vector.multi_reduction <add>, %301, %cst_175 [1] : vector<8x32xf32> to vector<8xf32>
    %303 = vector.shape_cast %302 : vector<8xf32> to vector<8x1xf32>
    %cst_176 = arith.constant 0.0322580636 : f32
    %304 = vector.broadcast %cst_176 : f32 to vector<8x1xf32>
    %305 = arith.mulf %303, %304 : vector<8x1xf32>
    %306 = vector.broadcast %298 : vector<8x1xf32> to vector<8x32xf32>
    %307 = arith.subf %292, %306 : vector<8x32xf32>
    %308 = vector.broadcast %293 : vector<1x32xf32> to vector<8x32xf32>
    %309 = arith.mulf %308, %307 : vector<8x32xf32>
    %310 = math.sqrt %305 : vector<8x1xf32>
    %cst_177 = arith.constant 9.99999997E-7 : f32
    %311 = vector.broadcast %cst_177 : f32 to vector<8x1xf32>
    %312 = arith.addf %310, %311 : vector<8x1xf32>
    %313 = vector.broadcast %312 : vector<8x1xf32> to vector<8x32xf32>
    %314 = arith.divf %309, %313 : vector<8x32xf32>
    %315 = vector.broadcast %294 : vector<1x32xf32> to vector<8x32xf32>
    %316 = arith.addf %314, %315 : vector<8x32xf32>
    %317 = arith.truncf %316 : vector<8x32xf32> to vector<8x32xbf16>
    %c0_178 = arith.constant 0 : index
    %c0_179 = arith.constant 0 : index
    %c0_180 = arith.constant 0 : index
    %318 = vector.load %arg18[%c0_178, %c0_179, %c0_180] : memref<1x32x64xbf16, #tpu.memory_space<vmem>>, vector<1x32x64xbf16>
    %319 = vector.shape_cast %318 : vector<1x32x64xbf16> to vector<32x64xbf16>
    %cst_181 = arith.constant dense<0.000000e+00> : vector<8x64xf32>
    %320 = tpu.matmul %317, %319, %cst_181 {dimension_numbers = #tpu.dot_dimension_numbers<[1], [0], [0], [1], [0, 0, 1, 1], [], []>} : vector<8x32xbf16>, vector<32x64xbf16>, vector<8x64xf32> -> vector<8x64xf32>
    %c0_182 = arith.constant 0 : index
    %c0_183 = arith.constant 0 : index
    %c0_184 = arith.constant 0 : index
    %321 = vector.load %arg19[%c0_182, %c0_183, %c0_184] : memref<1x1x64xf32, #tpu.memory_space<vmem>>, vector<1x1x64xf32>
    %322 = vector.shape_cast %321 : vector<1x1x64xf32> to vector<1x64xf32>
    %323 = vector.broadcast %322 : vector<1x64xf32> to vector<8x64xf32>
    %324 = arith.addf %320, %323 : vector<8x64xf32>
    %cst_185 = arith.constant 0.000000e+00 : f32
    %325 = vector.broadcast %cst_185 : f32 to vector<8x64xf32>
    %326 = arith.maximumf %324, %325 : vector<8x64xf32>
    %327 = arith.truncf %326 : vector<8x64xf32> to vector<8x64xbf16>
    %c0_186 = arith.constant 0 : index
    %c0_187 = arith.constant 0 : index
    %c0_188 = arith.constant 0 : index
    %328 = vector.load %arg20[%c0_186, %c0_187, %c0_188] : memref<1x64x32xbf16, #tpu.memory_space<vmem>>, vector<1x64x32xbf16>
    %329 = vector.shape_cast %328 : vector<1x64x32xbf16> to vector<64x32xbf16>
    %cst_189 = arith.constant dense<0.000000e+00> : vector<8x32xf32>
    %330 = tpu.matmul %327, %329, %cst_189 {dimension_numbers = #tpu.dot_dimension_numbers<[1], [0], [0], [1], [0, 0, 1, 1], [], []>} : vector<8x64xbf16>, vector<64x32xbf16>, vector<8x32xf32> -> vector<8x32xf32>
    %331 = arith.addf %292, %330 : vector<8x32xf32>
    %c0_190 = arith.constant 0 : index
    %c0_191 = arith.constant 0 : index
    %c0_192 = arith.constant 0 : index
    %332 = vector.load %arg21[%c0_190, %c0_191, %c0_192] : memref<1x1x32xf32, #tpu.memory_space<vmem>>, vector<1x1x32xf32>
    %333 = vector.shape_cast %332 : vector<1x1x32xf32> to vector<1x32xf32>
    %334 = vector.broadcast %333 : vector<1x32xf32> to vector<8x32xf32>
    %335 = arith.addf %331, %334 : vector<8x32xf32>
    %c0_193 = arith.constant 0 : index
    %c0_194 = arith.constant 0 : index
    %336 = vector.load %arg25[%c0_193, %c0_194] : memref<8x32xf32, #tpu.memory_space<vmem>>, vector<8x32xf32>
    tpu.vector_store %arg25[%c0_193, %c0_194], %335 {strides = array<i32>} : memref<8x32xf32, #tpu.memory_space<vmem>>, vector<8x32xf32>,
    %c1_i32 = arith.constant 1 : i32
    %337 = arith.cmpi eq, %arg1, %c1_i32 : i32
    %338 = arith.extui %337 : i1 to i32
    %c0_i32_195 = arith.constant 0 : i32
    %339 = arith.cmpi ne, %338, %c0_i32_195 : i32
    scf.if %339 {
      %c0_196 = arith.constant 0 : index
      %c0_197 = arith.constant 0 : index
      %340 = vector.load %arg22[%c0_196, %c0_197] : memref<1x32xf32, #tpu.memory_space<vmem>>, vector<1x32xf32>
      %c0_198 = arith.constant 0 : index
      %c0_199 = arith.constant 0 : index
      %341 = vector.load %arg23[%c0_198, %c0_199] : memref<1x32xf32, #tpu.memory_space<vmem>>, vector<1x32xf32>
      %cst_200 = arith.constant dense<0.000000e+00> : vector<8xf32>
      %342 = vector.multi_reduction <add>, %335, %cst_200 [1] : vector<8x32xf32> to vector<8xf32>
      %343 = vector.shape_cast %342 : vector<8xf32> to vector<8x1xf32>
      %cst_201 = arith.constant 3.200000e+01 : f32
      %344 = vector.broadcast %cst_201 : f32 to vector<8x1xf32>
      %345 = arith.divf %343, %344 : vector<8x1xf32>
      %346 = vector.broadcast %345 : vector<8x1xf32> to vector<8x32xf32>
      %347 = arith.subf %335, %346 : vector<8x32xf32>
      %348 = arith.mulf %347, %347 : vector<8x32xf32>
      %cst_202 = arith.constant dense<0.000000e+00> : vector<8xf32>
      %349 = vector.multi_reduction <add>, %348, %cst_202 [1] : vector<8x32xf32> to vector<8xf32>
      %350 = vector.shape_cast %349 : vector<8xf32> to vector<8x1xf32>
      %cst_203 = arith.constant 0.0322580636 : f32
      %351 = vector.broadcast %cst_203 : f32 to vector<8x1xf32>
      %352 = arith.mulf %350, %351 : vector<8x1xf32>
      %353 = vector.broadcast %345 : vector<8x1xf32> to vector<8x32xf32>
      %354 = arith.subf %335, %353 : vector<8x32xf32>
      %355 = vector.broadcast %340 : vector<1x32xf32> to vector<8x32xf32>
      %356 = arith.mulf %355, %354 : vector<8x32xf32>
      %357 = math.sqrt %352 : vector<8x1xf32>
      %cst_204 = arith.constant 9.99999997E-7 : f32
      %358 = vector.broadcast %cst_204 : f32 to vector<8x1xf32>
      %359 = arith.addf %357, %358 : vector<8x1xf32>
      %360 = vector.broadcast %359 : vector<8x1xf32> to vector<8x32xf32>
      %361 = arith.divf %356, %360 : vector<8x32xf32>
      %362 = vector.broadcast %341 : vector<1x32xf32> to vector<8x32xf32>
      %363 = arith.addf %361, %362 : vector<8x32xf32>
      %c0_205 = arith.constant 0 : index
      %c0_206 = arith.constant 0 : index
      %c0_207 = arith.constant 0 : index
      %364 = vector.load %arg24[%c0_205, %c0_206, %c0_207] : memref<1x8x32xf32, #tpu.memory_space<vmem>>, vector<1x8x32xf32>
      %365 = vector.shape_cast %364 : vector<1x8x32xf32> to vector<8x32xf32>
      %366 = vector.shape_cast %363 : vector<8x32xf32> to vector<1x8x32xf32>
      tpu.vector_store %arg24[%c0_205, %c0_206, %c0_207], %366 {strides = array<i32>} : memref<1x8x32xf32, #tpu.memory_space<vmem>>, vector<1x8x32xf32>,
    } else {
    }
    return
  }
  func.func @transform_0(%arg0: i32, %arg1: i32) -> (i32, i32, i32) {
    %c0_i32 = arith.constant 0 : i32
    %c0_i32_0 = arith.constant 0 : i32
    %c0_i32_1 = arith.constant 0 : i32
    return %arg0, %c0_i32, %c0_i32_0 : i32, i32, i32
  }
  func.func @transform_1(%arg0: i32, %arg1: i32) -> (i32, i32, i32) {
    %c0_i32 = arith.constant 0 : i32
    %c0_i32_0 = arith.constant 0 : i32
    %c0_i32_1 = arith.constant 0 : i32
    return %arg0, %c0_i32, %c0_i32_0 : i32, i32, i32
  }
  func.func @transform_2(%arg0: i32, %arg1: i32) -> (i32, i32, i32) {
    %c0_i32 = arith.constant 0 : i32
    %c0_i32_0 = arith.constant 0 : i32
    %c0_i32_1 = arith.constant 0 : i32
    return %arg0, %c0_i32, %c0_i32_0 : i32, i32, i32
  }
  func.func @transform_3(%arg0: i32, %arg1: i32) -> (i32, i32, i32) {
    %c0_i32 = arith.constant 0 : i32
    %c0_i32_0 = arith.constant 0 : i32
    %c0_i32_1 = arith.constant 0 : i32
    return %arg0, %c0_i32, %c0_i32_0 : i32, i32, i32
  }
  func.func @transform_4(%arg0: i32, %arg1: i32) -> (i32, i32, i32) {
    %c0_i32 = arith.constant 0 : i32
    %c0_i32_0 = arith.constant 0 : i32
    %c0_i32_1 = arith.constant 0 : i32
    return %arg1, %c0_i32, %c0_i32_0 : i32, i32, i32
  }
  func.func @transform_5(%arg0: i32, %arg1: i32) -> (i32, i32, i32) {
    %c0_i32 = arith.constant 0 : i32
    %c0_i32_0 = arith.constant 0 : i32
    %c0_i32_1 = arith.constant 0 : i32
    return %arg1, %c0_i32, %c0_i32_0 : i32, i32, i32
  }
  func.func @transform_6(%arg0: i32, %arg1: i32) -> (i32, i32, i32) {
    %c0_i32 = arith.constant 0 : i32
    %c0_i32_0 = arith.constant 0 : i32
    %c0_i32_1 = arith.constant 0 : i32
    return %arg1, %c0_i32, %c0_i32_0 : i32, i32, i32
  }
  func.func @transform_7(%arg0: i32, %arg1: i32) -> (i32, i32, i32) {
    %c0_i32 = arith.constant 0 : i32
    %c0_i32_0 = arith.constant 0 : i32
    %c0_i32_1 = arith.constant 0 : i32
    return %arg1, %c0_i32, %c0_i32_0 : i32, i32, i32
  }
  func.func @transform_8(%arg0: i32, %arg1: i32) -> (i32, i32, i32) {
    %c0_i32 = arith.constant 0 : i32
    %c0_i32_0 = arith.constant 0 : i32
    %c0_i32_1 = arith.constant 0 : i32
    return %arg1, %c0_i32, %c0_i32_0 : i32, i32, i32
  }
  func.func @transform_9(%arg0: i32, %arg1: i32) -> (i32, i32, i32) {
    %c0_i32 = arith.constant 0 : i32
    %c0_i32_0 = arith.constant 0 : i32
    %c0_i32_1 = arith.constant 0 : i32
    return %arg1, %c0_i32, %c0_i32_0 : i32, i32, i32
  }
  func.func @transform_10(%arg0: i32, %arg1: i32) -> (i32, i32, i32) {
    %c0_i32 = arith.constant 0 : i32
    %c0_i32_0 = arith.constant 0 : i32
    %c0_i32_1 = arith.constant 0 : i32
    return %arg1, %c0_i32, %c0_i32_0 : i32, i32, i32
  }
  func.func @transform_11(%arg0: i32, %arg1: i32) -> (i32, i32, i32) {
    %c0_i32 = arith.constant 0 : i32
    %c0_i32_0 = arith.constant 0 : i32
    %c0_i32_1 = arith.constant 0 : i32
    return %arg1, %c0_i32, %c0_i32_0 : i32, i32, i32
  }
  func.func @transform_12(%arg0: i32, %arg1: i32) -> (i32, i32, i32) {
    %c0_i32 = arith.constant 0 : i32
    %c0_i32_0 = arith.constant 0 : i32
    %c0_i32_1 = arith.constant 0 : i32
    return %arg1, %c0_i32, %c0_i32_0 : i32, i32, i32
  }
  func.func @transform_13(%arg0: i32, %arg1: i32) -> (i32, i32, i32) {
    %c0_i32 = arith.constant 0 : i32
    %c0_i32_0 = arith.constant 0 : i32
    %c0_i32_1 = arith.constant 0 : i32
    return %arg1, %c0_i32, %c0_i32_0 : i32, i32, i32
  }
  func.func @transform_14(%arg0: i32, %arg1: i32) -> (i32, i32, i32) {
    %c0_i32 = arith.constant 0 : i32
    %c0_i32_0 = arith.constant 0 : i32
    %c0_i32_1 = arith.constant 0 : i32
    return %arg1, %c0_i32, %c0_i32_0 : i32, i32, i32
  }
  func.func @transform_15(%arg0: i32, %arg1: i32) -> (i32, i32, i32) {
    %c0_i32 = arith.constant 0 : i32
    %c0_i32_0 = arith.constant 0 : i32
    %c0_i32_1 = arith.constant 0 : i32
    return %arg1, %c0_i32, %c0_i32_0 : i32, i32, i32
  }
  func.func @transform_16(%arg0: i32, %arg1: i32) -> (i32, i32, i32) {
    %c0_i32 = arith.constant 0 : i32
    %c0_i32_0 = arith.constant 0 : i32
    %c0_i32_1 = arith.constant 0 : i32
    return %arg1, %c0_i32, %c0_i32_0 : i32, i32, i32
  }
  func.func @transform_17(%arg0: i32, %arg1: i32) -> (i32, i32, i32) {
    %c0_i32 = arith.constant 0 : i32
    %c0_i32_0 = arith.constant 0 : i32
    %c0_i32_1 = arith.constant 0 : i32
    return %arg1, %c0_i32, %c0_i32_0 : i32, i32, i32
  }
  func.func @transform_18(%arg0: i32, %arg1: i32) -> (i32, i32, i32) {
    %c0_i32 = arith.constant 0 : i32
    %c0_i32_0 = arith.constant 0 : i32
    %c0_i32_1 = arith.constant 0 : i32
    return %arg1, %c0_i32, %c0_i32_0 : i32, i32, i32
  }
  func.func @transform_19(%arg0: i32, %arg1: i32) -> (i32, i32, i32) {
    %c0_i32 = arith.constant 0 : i32
    %c0_i32_0 = arith.constant 0 : i32
    %c0_i32_1 = arith.constant 0 : i32
    return %arg1, %c0_i32, %c0_i32_0 : i32, i32, i32
  }
  func.func @transform_20(%arg0: i32, %arg1: i32) -> (i32, i32) {
    %c0_i32 = arith.constant 0 : i32
    %c0_i32_0 = arith.constant 0 : i32
    %c0_i32_1 = arith.constant 0 : i32
    return %c0_i32, %c0_i32_0 : i32, i32
  }
  func.func @transform_21(%arg0: i32, %arg1: i32) -> (i32, i32) {
    %c0_i32 = arith.constant 0 : i32
    %c0_i32_0 = arith.constant 0 : i32
    %c0_i32_1 = arith.constant 0 : i32
    return %c0_i32, %c0_i32_0 : i32, i32
  }
  func.func @transform_22(%arg0: i32, %arg1: i32) -> (i32, i32, i32) {
    %c0_i32 = arith.constant 0 : i32
    %c0_i32_0 = arith.constant 0 : i32
    %c0_i32_1 = arith.constant 0 : i32
    return %arg0, %c0_i32, %c0_i32_0 : i32, i32, i32
  }
}

</mosaic_0001>

<bundles_post_ra>
// kernel: decoder_forward.1
= control target key start
LH: loop header
LB: loop body
LE: loop exit
PB: predicated region body
PF: predicated region fallthrough
CT: control target
= control target key end

     0   :  { %s3352_s0 = inlined_call_operand.vmem [shape: f32[2,8,32], index: 0, kind: input, shape index: {}]   ;;  %s3353_s1 = inlined_call_operand.vmem [shape: bf16[2,8,32], index: 1, kind: input, shape index: {}]   ;;  %s3354_s2 = inlined_call_operand.vmem [shape: f32[2,8,8], index: 2, kind: input, shape index: {}]   ;;  %s3355_s3 = inlined_call_operand.vmem [shape: f32[2,8,8], index: 3, kind: input, shape index: {}]   ;;  %s3356_s4 = inlined_call_operand.vmem [shape: f32[2,3,32], index: 4, kind: input, shape index: {}]   ;;  %s3357_s5 = inlined_call_operand.vmem [shape: f32[2,3,32], index: 5, kind: input, shape index: {}]   ;;  %s3358_s6 = inlined_call_operand.vmem [shape: bf16[2,32,96], index: 6, kind: input, shape index: {}]   ;;  %s3359_s7 = inlined_call_operand.vmem [shape: f32[2,1,96], index: 7, kind: input, shape index: {}]   ;;  %s3360_s8 = inlined_call_operand.vmem [shape: bf16[2,32,32], index: 8, kind: input, shape index: {}]   ;;  %s3361_s9 = inlined_call_operand.vmem [shape: f32[2,1,32], index: 9, kind: input, shape index: {}]   ;;  %s3362_s10 = inlined_call_operand.vmem [shape: bf16[2,32,32], index: 10, kind: input, shape index: {}]   ;;  %s3363_s11 = inlined_call_operand.vmem [shape: f32[2,1,32], index: 11, kind: input, shape index: {}]   ;;  %s3364_s12 = inlined_call_operand.vmem [shape: bf16[2,32,64], index: 12, kind: input, shape index: {}]   ;;  %s3365_s13 = inlined_call_operand.vmem [shape: f32[2,1,64], index: 13, kind: input, shape index: {}]   ;;  %s3366_s14 = inlined_call_operand.vmem [shape: bf16[2,32,32], index: 14, kind: input, shape index: {}]   ;;  %s3367_s15 = inlined_call_operand.vmem [shape: f32[2,1,32], index: 15, kind: input, shape index: {}]   ;;  %s3368_s16 = inlined_call_operand.vmem [shape: bf16[2,32,64], index: 16, kind: input, shape index: {}]   ;;  %s3369_s17 = inlined_call_operand.vmem [shape: f32[2,1,64], index: 17, kind: input, shape index: {}]   ;;  %s3370_s18 = inlined_call_operand.vmem [shape: bf16[2,64,32], index: 18, kind: input, shape index: {}]   ;;  %s3371_s19 = inlined_call_operand.vmem [shape: f32[2,1,32], index: 19, kind: input, shape index: {}]   ;;  %s3372_s20 = inlined_call_operand.vmem [shape: f32[1,32], index: 20, kind: input, shape index: {}]   ;;  %s3373_s21 = inlined_call_operand.vmem [shape: f32[1,32], index: 21, kind: input, shape index: {}]   ;;  %s3374_s22 = inlined_call_operand.hbm [shape: f32[2,8,32], index: 22, kind: output, shape index: {}]  }
   0x1   :  { %3394 = sst [smem:[#allocation29_spill]] %s3352_s0 }
   0x2   :  { %3395 = sst [smem:[#allocation30_spill]] %s3353_s1 }
   0x3   :  { %3396 = sst [smem:[#allocation31_spill]] %s3354_s2 }
   0x4   :  { %3397 = sst [smem:[#allocation32_spill]] %s3355_s3 }
   0x5   :  { %3398 = sst [smem:[#allocation33_spill]] %s3356_s4 }
   0x6   :  { %3399 = sst [smem:[#allocation34_spill]] %s3357_s5 }
   0x7   :  { %3400 = sst [smem:[#allocation35_spill]] %s3358_s6 }
   0x8   :  { %3401 = sst [smem:[#allocation36_spill]] %s3360_s8 }
   0x9   :  { %3402 = sst [smem:[#allocation37_spill]] %s3361_s9 }
   0xa   :  { %3403 = sst [smem:[#allocation38_spill]] %s3362_s10 }
   0xb   :  { %3404 = sst [smem:[#allocation39_spill]] %s3363_s11 }
   0xc   :  { %3405 = sst [smem:[#allocation40_spill]] %s3364_s12 }
   0xd   :  { %3406 = sst [smem:[#allocation41_spill]] %s3365_s13 }
   0xe   :  { %3407 = sst [smem:[#allocation42_spill]] %s3366_s14 }
   0xf   :  { %3408 = sst [smem:[#allocation43_spill]] %s3368_s16 }
  0x10   :  { %3409 = sst [smem:[#allocation44_spill]] %s3369_s17 }
  0x11   :  { %3410 = sst [smem:[#allocation45_spill]] %s3370_s18 }
  0x12   :  { %3411 = sst [smem:[#allocation46_spill]] %s3371_s19 }
  0x13   :  { %3412 = sst [smem:[#allocation47_spill]] %s3372_s20 }
  0x14   :  { %3413 = sst [smem:[#allocation48_spill]] %s3373_s21 }
  0x15   :  { %3414 = sst [smem:[#allocation49_spill]] %s3374_s22 }
  0x16   :  { %27 = vsyncpa [#allocation10], 0 }
  0x17   :  { %29 = vsyncpa [#allocation10 + $0x1], 0  ;;  %s2882_s3 = smov 0   ;;  %s2884_s28 = smov 0  }
  0x18   :  { %s2886_s29 = smov 0   ;;  %s2888_s30 = smov 0  }
  0x19   :  { %s2890_s4 = smov 0   ;;  %s2892_s0 = smov 0  }
  0x1a   :  { %s2894_s23 = smov 0   ;;  %s2896_s1 = smov 0  }
  0x1b LB: > { %3415 = sst [smem:[#allocation12_spill]] %s2722_s3  ;;  %s2369_s5 = sadd.s32 4294967295, %s2750_s1   ;;  %s2750_s1 = sphi %s2896_s1, %s35_s1   ;;  %s2746_s23 = sphi %s2894_s23, %s3487_s23   ;;  %s2742_s0 = sphi %s2892_s0, %s3486_s0   ;;  %s2738_s4 = sphi %s2890_s4, %s3485_s4   ;;  %s2734_s30 = sphi %s2888_s30, %s3484_s30   ;;  %s2730_s29 = sphi %s2886_s29, %s3483_s29   ;;  %s2726_s28 = sphi %s2884_s28, %s3482_s28   ;;  %s2722_s3 = sphi %s2882_s3, %s3481_s3  }
  0x1c   : > { %3416 = sst [smem:[#allocation13_spill]] %s2726_s28  ;;  %s2370_s24 = sadd.s32 4294967294, %s2750_s1  }
  0x1d   : > { %3417 = sst [smem:[#allocation14_spill]] %s2730_s29  ;;  %s44_s6 = sadd.s32 1, %s2742_s0 }
  0x1e   : > { %3418 = sst [smem:[#allocation15_spill]] %s2734_s30  ;;  %p45_p0 = scmp.ge.s32.totalorder %s44_s6, 2 }
  0x1f   : > { %3419 = sst [smem:[#allocation16_spill]] %s2738_s4  ;;  %s47_s25 = sadd.s32 1, %s2746_s23 }
  0x20   : > { %3420 = sst [smem:[#allocation17_spill]] %s2742_s0  ;;  %p626_p1 = scmp.ne.s32.totalorder %s2730_s29, %s2726_s28 }
  0x21   : > { %3421 = sst [smem:[#allocation18_spill]] %s2746_s23  ;;  %p627_p2 = scmp.eq.s32.totalorder %s2369_s5, 3 }
  0x22   : > { %3422 = sst [smem:[#allocation19_spill]] %s2750_s1  ;;  %s3489_s6 = smov (%p45_p0, %s44_s6), 0 }
  0x23   : > { %3423 = sst [smem:[#allocation20_spill]] %s3489_s6  ;;  %s3491_s25 = smov (!%p45_p0, %s47_s25), %s2746_s23 }
  0x24   : > { %p2931_p3 = por %p627_p2, %p626_p1  ;;  %p632_p4 = scmp.ne.s32.totalorder %s2726_s28, %s2722_s3 }
  0x25   : > { %p49_p5 = scmp.ge.s32.totalorder %s3491_s25, 2  ;;  %p633_p6 = scmp.eq.s32.totalorder %s2370_s24, 3 }
  0x26   : > { %s3424_s26 = scalar_select %p2931_p3, 1, 0 }
  0x27   : > { %p2373_p7 = scmp.ge.s32.totalorder %s2750_s1, 1  ;;  %p797_p8 = scmp.lt.s32.totalorder %s2750_s1, 5 }
  0x28   : > { %3425 = sst [smem:[#allocation21_spill]] %s3424_s26  ;;  %s3493_s25 = smov (%p49_p5, %s3491_s25), 0 }
  0x29   : > { %3426 = sst [smem:[#allocation22_spill]] %s3493_s25  ;;  %p2941_p9 = por %p633_p6, %p632_p4 }
  0x2a   : > { %p798_p10 = pnand %p2373_p7, %p797_p8  ;;  %s613_s27 = ssub.s32 %s2746_s23, %s3493_s25 }
  0x2b   : > { %s3427_s2 = scalar_select %p2941_p9, 1, 0 }
  0x2c   : > { %s616_s5 = sadd.s32 1, %s2730_s29  ;;  %p614_p11 = scmp.eq.s32.totalorder %s613_s27, 0 }
  0x2d   : > { %3428 = sst [smem:[#allocation23_spill]] %s3427_s2  ;;  %801 = sbr.rel (%p798_p10) target bundleno = 3621 (0xe25), region = 108 }
  0x2e   : > { %s2949_s6 = scalar_select %p614_p11, %s2730_s29, %s616_s5  }
  0x30   : > { %3429 = sst [smem:[#allocation24_spill]] %s2949_s6 }
  0x32   : > { %s3380_s24 = sand.u32 1, %s2726_s28   ;;  %p934_p12 = scmp.lt.s32.totalorder %s2738_s4, 1 }
  0x33   : > { %s2955_s0 = sshll.u32 %s3380_s24, 3  ;;  %p950_p13 = scmp.lt.s32.totalorder %s2734_s30, 1 }
  0x34   : > { %s935_s2 = scalar_select %p934_p12, %s2738_s4, 1 }
  0x35   : > { %s2960_s3 = scalar_select %p950_p13, %s2734_s30, 1 }
  0x36   : > { %s2962_s27 = sshll.u32 %s935_s2, 3  ;;  %s2376_s5 = sshll.u32 %s935_s2, 2 }
  0x37   : > { %3430 = sst [smem:[#allocation25_spill]] %s2962_s27  ;;  %s2379_s2 = sshll.u32 %s2960_s3, 2 }
  0x38   : > { %s3431_s6 = sld [smem:[#allocation29_spill]]  ;;  %s2488_s23 = sshll.u32 %s2960_s3, 4 }
  0x39   : > { %s3432_s22 = sld [smem:[#allocation30_spill]] }
  0x3a   : > { %s3436_s16 = sld [smem:[#allocation33_spill]] }
  0x3b   : > { %s3438_s20 = sld [smem:[#allocation35_spill]] }
  0x3c   : > { %s3439_s8 = sld [smem:[#allocation36_spill]] }
  0x3d   : > { %s3441_s10 = sld [smem:[#allocation38_spill]] }
  0x3e   : > { %s937_s24 = scalar_lea.vmem %s3431_s6, %s2962_s27  ;;  %s3444_s12 = sld [smem:[#allocation40_spill]] }
  0x3f   : > { %s2971_s26 = scalar_lea.vmem %s3432_s22, %s2376_s5  ;;  %s3437_s5 = sld [smem:[#allocation34_spill]] }
  0x40   : > { %3433 = sst [smem:[#allocation26_spill]] %s2971_s26  ;;  %s2986_s29 = scalar_lea.vmem %s3436_s16, %s2379_s2 }
  0x41   : > { %s2996_s18 = scalar_lea.vmem %s3438_s20, %s2488_s23  ;;  %s3446_s14 = sld [smem:[#allocation42_spill]] }
  0x42   : > { %s3005_s16 = scalar_lea.vmem %s3439_s8, %s2488_s23  ;;  %s3448_s4 = sld [smem:[#allocation43_spill]] }
  0x43   : > { %s2494_s26 = sshll.u32 %s2960_s3, 5  ;;  %s3450_s13 = sld [smem:[#allocation46_spill]] }
  0x44   : > { %s3023_s17 = scalar_lea.vmem %s3444_s12, %s2488_s23  ;;  %s3449_s12 = sld [smem:[#allocation44_spill]] }
  0x45   : > { %s2991_s28 = scalar_lea.vmem %s3437_s5, %s2379_s2  ;;  %s3014_s5 = scalar_lea.vmem %s3441_s10, %s2488_s23 }
  0x46   : > { %3442 = sst [smem:[#allocation27_spill]] %s3014_s5  ;;  %s997_s10 = scalar_lea.vmem %s3367_s15, %s2960_s3 }
  0x47   : > { %s3032_s2 = scalar_lea.vmem %s3446_s14, %s2488_s23  ;;  %s933_s22 = scalar_lea.vmem [#allocation9], %s2955_s0 }
  0x48   : > { %3447 = sst [smem:[#allocation28_spill]] %s3032_s2  ;;  %s3041_s11 = scalar_lea.vmem %s3448_s4, %s2488_s23 }
  0x49   : > { %s1013_s27 = scalar_lea.vmem %s3450_s13, %s2960_s3  ;;  %s3451_s2 = sld [smem:[#allocation45_spill]] }
  0x4a   : > { %s1005_s5 = scalar_lea.vmem %s3449_s12, %s2960_s3  ;;  %s3452_s1 = sld [smem:[#allocation15_spill]] }
  0x4f   : > { %s3055_s9 = scalar_lea.vmem %s3451_s2, %s2494_s26 }
  0x50   : > { %p2395_p0 = scmp.ne.s32.totalorder %s3452_s1, 0 }
  0x52   : > { %1018 = sbr.rel (%p2395_p0) target bundleno = 89 (0x59), region = 112 }
  0x57   : > { %v1019_v0 = vld [vmem:[%s937_s24] sm:$0xff]  ;;  %vm1020_vm0 = vcmask 261120  }
  0x58   : > { %1021 = vst.msk [vmem:[#allocation2] sm:$0xff] %vm1020_vm0, %v1019_v0 }
  0x59 PF: > { %vm1025_vm1 = vcmask 261120   ;;  %v2752_v3 = vmov 32.0   ;;  %v2496_v15 = vld [vmem:[%s2996_s18 + $0x8] sm:$0xff]  ;;  %v2495_v16 = vld [vmem:[%s2996_s18] sm:$0xff]  ;;  %s3453_s13 = scalar_lea.vmem %s3359_s7, %s2960_s3  ;;  %vm1113_vm9 = vcmask 60416   ;;  %s2753_s14 = smov 72  }
  0x5a   : > { %2604 = vrcp.f32 %v2752_v3  ;;  %1105 = vmatpush.bf16.msra.mxu0 %v2496_v15  ;;  %v3071_v32 = vld [vmem:[%s2986_s29] sm:$0x7]  ;;  %s2754_s24 = smov 120   ;;  %s2755_s23 = smov 88   ;;  %vm1182_vm10 = vcmask 64512   ;;  %vm1310_vm11 = vcmask 1043456  }
  0x5b   : > { %v1043_v35 = vperm.slane %v3071_v32, 0  ;;  %v3075_v38 = vld [vmem:[%s2991_s28] sm:$0x7]  ;;  %s2756_s29 = smov 112   ;;  %s2757_s28 = smov 80   ;;  %vm1391_vm12 = vcmask 126016  }
  0x5c   : > { %v1073_v43 = vperm.slane %v3075_v38, 0  ;;  %v2597_v48 = vld [vmem:[%s3453_s13] ss:$0 sm:$0xff]  ;;  %s2758_s18 = smov 96   ;;  %s2759_s2 = smov 104   ;;  %vm1398_vm13 = vcmask 191616  }
  0x5d   : > { %s3454_s4 = sld [smem:[#allocation25_spill]]  ;;  %s2760_s26 = smov 48   ;;  %vm1405_vm14 = vcmask 257216  }
  0x5e   : > { %1106 = vmatpush.bf16.msra.mxu0 %v2495_v16  ;;  %s3455_s19 = sld [smem:[#allocation31_spill]]  ;;  %s2761_s25 = smov 56  }
  0x5f   : > { %v3059_v1 = vld [vmem:[#allocation2] sm:$0xff]  ;;  %s2762_s6 = smov 64   ;;  %s2763_s1 = smov 40  }
  0x60   : > { %v1026_v2 = vsel %vm1025_vm1, %v3059_v1, 0.0  ;;  %v2605_v4 = vpop.eup %2604  ;;  %s2764_s8 = smov 8   ;;  %s2765_s12 = smov 16  }
  0x61   : > { %1027 = vadd.xlane.f32.xlu0 %v1026_v2  ;;  %v1030_v5 = vmul.f32 32.0, %v2605_v4  ;;  %vm1034_vm2 = vweird.f32 %v2605_v4  ;;  %s2766_s13 = smov 24  }
  0x63   : > { %v1031_v6 = vsub.f32 1.0, %v1030_v5 }
  0x64   : > { %s3456_s30 = scalar_lea.vmem %s3455_s19, %s3454_s4 }
  0x65   : > { %v1032_v7 = vmul.f32 %v2605_v4, %v1031_v6 }
  0x67   : > { %v1033_v8 = vadd.f32 %v2605_v4, %v1032_v7 }
  0x69   : > { %v3063_v9 = vsel %vm1034_vm2, %v2605_v4, %v1033_v8 }
  0xd4   : > { %v1028_v10 = vpop.xlane.xlu0 %1027 }
  0xd5   : > { %v1036_v11 = vmul.f32 %v3063_v9, %v1028_v10 }
  0xd7   : > { %v1037_v12 = vsub.f32 %v3059_v1, %v1036_v11 }
  0xd9   : > { %v1038_v13 = vmul.f32 %v1037_v12, %v1037_v12  ;;  %v1044_v41 = vmul.f32 %v1043_v35, %v1037_v12  ;;  %v1169_v12 = vld [vmem:[%s3456_s30] sm:$0xff]  ;;  %s3459_s30 = sld [smem:[#allocation27_spill]] }
  0xdb   : > { %v1039_v14 = vsel %vm1025_vm1, %v1038_v13, 0.0 }
  0xdc   : > { %1040 = vadd.xlane.f32.xlu0 %v1039_v14 }
 0x14f   : > { %v1041_v17 = vpop.xlane.xlu0 %1040 }
 0x150   : > { %v1042_v18 = vmul.f32 0.032258064, %v1041_v17 }
 0x152   : > { %2606 = vrsqrt.f32 %v1042_v18  ;;  %vm1052_vm3 = vcmp.eq.f32.partialorder %v1042_v18, inf  ;;  %v1055_v26 = vand.u32 2147483648, %v1042_v18  ;;  %vm1054_vm4 = vcmp.eq.f32.partialorder %v1042_v18, 0.0 }
 0x158   : > { %v2607_v19 = vpop.eup %2606 }
 0x159   : > { %v1046_v20 = vmul.f32 %v2607_v19, %v1042_v18 }
 0x15b   : > { %v1047_v21 = vmul.f32 %v2607_v19, %v1046_v20 }
 0x15d   : > { %v1048_v22 = vmul.f32 0.5, %v1047_v21 }
 0x15f   : > { %v1049_v23 = vsub.f32 1.5, %v1048_v22 }
 0x161   : > { %v1050_v24 = vmul.f32 %v2607_v19, %v1049_v23 }
 0x163   : > { %v1051_v25 = vmul.f32 %v1050_v24, %v1042_v18 }
 0x165   : > { %v1053_v27 = vsel %vm1052_vm3, %v1042_v18, %v1051_v25 }
 0x166   : > { %v1056_v28 = vsel %vm1054_vm4, %v1055_v26, %v1053_v27 }
 0x167   : > { %v1057_v29 = vadd.f32 1e-06, %v1056_v28 }
 0x169   : > { %2608 = vrcp.f32 %v1057_v29  ;;  %v1069_v34 = vand.u32 2147483648, %v1057_v29  ;;  %v1067_v37 = vand.u32 2147483647, %v1057_v29  ;;  %vm1063_vm6 = vweird.f32 %v1057_v29 }
 0x16b   : > { %v1070_v40 = vor.u32 1.1754944e-38, %v1069_v34  ;;  %vm1068_vm8 = vcmp.eq.f32.partialorder %v1067_v37, 8.507059e+37 }
 0x16f   : > { %v2609_v30 = vpop.eup %2608 }
 0x170   : > { %v1059_v31 = vmul.f32 %v2609_v30, %v1057_v29  ;;  %vm1064_vm5 = vweird.f32 %v2609_v30 }
 0x171   : > { %vm1065_vm7 = vmor %vm1063_vm6, %vm1064_vm5 }
 0x172   : > { %v1060_v33 = vsub.f32 1.0, %v1059_v31 }
 0x174   : > { %v1061_v36 = vmul.f32 %v2609_v30, %v1060_v33 }
 0x176   : > { %v1062_v39 = vadd.f32 %v2609_v30, %v1061_v36 }
 0x178   : > { %v1066_v42 = vsel %vm1065_vm7, %v2609_v30, %v1062_v39 }
 0x179   : > { %v1071_v44 = vsel %vm1068_vm8, %v1070_v40, %v1066_v42 }
 0x17a   : > { %v1072_v45 = vmul.f32 %v1071_v44, %v1044_v41 }
 0x17c   : > { %v1074_v46 = vadd.f32 %v1073_v43, %v1072_v45 }
 0x17e   : > { %v1075_v47 = vpack.c.bf16 %v1074_v46, %v1074_v46 }
 0x180   : > { %2404 = vmatmul.msk.bf16.vlgmr.msra.gmra.mxu0 %vm1025_vm1, %v1075_v47 }
 0x1fd   : > { %v1108_v49 = vpop.f32.mrf.mxu0 }
 0x1fe   : > { %v1109_v50 = vadd.f32 %v2597_v48, %v1108_v49 }
 0x200   : > { %v3084_v51 = vpack.c.bf16 %v1109_v50, %v1109_v50 }
 0x202   : > { %1159 = vrot.lane.b32.xlu0 %v3084_v51, %s2753_s14  ;;  %1124 = vrot.lane.b32.xlu2 %v3084_v51, %s2754_s24  ;;  %1114 = vst.msk [vmem:[#allocation3] sm:$0xf] %vm1113_vm9, %v3084_v51 }
 0x203   : > { %1129 = vrot.lane.b32.xlu1 %v3084_v51, %s2755_s23 }
 0x205   : > { %v1110_v52 = vpop.f32.mrf.mxu0 }
 0x209   : > { %v1170_v60 = vld [vmem:[#allocation3] sm:$0xf] }
 0x20a   : > { %1139 = vrot.lane.b32.xlu2 %v3084_v51, %s2756_s29 }
 0x20b   : > { %1144 = vrot.lane.b32.xlu1 %v3084_v51, %s2757_s28 }
 0x212   : > { %1116 = vrot.lane.b32.xlu2 %v3084_v51, %s2758_s18 }
 0x213   : > { %1154 = vrot.lane.b32.xlu1 %v3084_v51, %s2759_s2 }
 0x25c   : > { %v1125_v53 = vpop.permute.xlu2 %1124 }
 0x25d   : > { %1128 = vst.msk [vmem:[#allocation3 + $0x4] sm:$0xf] %vm1113_vm9, %v1125_v53 }
 0x264   : > { %v1140_v54 = vpop.permute.xlu2 %1139  ;;  %v1171_v4 = vld [vmem:[#allocation3 + $0x4] sm:$0xf] }
 0x265   : > { %1143 = vst.msk [vmem:[#allocation3 + $0x8] sm:$0xf] %vm1113_vm9, %v1140_v54 }
 0x26c   : > { %v1117_v55 = vpop.permute.xlu2 %1116  ;;  %v1172_v7 = vld [vmem:[#allocation3 + $0x8] sm:$0xf] }
 0x26d   : > { %1119 = vst.msk [vmem:[#allocation4] sm:$0xf] %vm1113_vm9, %v1117_v55 }
 0x274   : > { %v1160_v56 = vpop.permute.xlu0 %1159  ;;  %v1174_v57 = vld [vmem:[#allocation4] sm:$0xf] }
 0x275   : > { %1163 = vst.msk [vmem:[#allocation4 + $0xc] sm:$0xf] %vm1113_vm9, %v1160_v56  ;;  %v1130_v58 = vpop.permute.xlu1 %1129  ;;  %v1187_v59 = vsel %vm1182_vm10, %v1174_v57, 0 }
 0x276   : > { %1133 = vst.msk [vmem:[#allocation4 + $0x4] sm:$0xf] %vm1113_vm9, %v1130_v58  ;;  %1196 = vmatpush.bf16.xpose.msra.mxu1 %v1187_v59 }
 0x27c   : > { %v1177_v61 = vld [vmem:[#allocation4 + $0xc] sm:$0xf] }
 0x27d   : > { %v1145_v62 = vpop.permute.xlu1 %1144  ;;  %2405 = vmatmul.msk.bf16.vlgmr.msra.gmra.mxu1 %vm1182_vm10, %v1170_v60  ;;  %v1175_v63 = vld [vmem:[#allocation4 + $0x4] sm:$0xf]  ;;  %v1244_v0 = vsel %vm1182_vm10, %v1177_v61, 0 }
 0x27e   : > { %1148 = vst.msk [vmem:[#allocation4 + $0x8] sm:$0xf] %vm1113_vm9, %v1145_v62  ;;  %v1206_v2 = vsel %vm1182_vm10, %v1175_v63, 0  ;;  %1253 = vmatpush.bf16.xpose.msrb.mxu0 %v1244_v0 }
 0x27f   : > { %1215 = vmatpush.bf16.xpose.msra.mxu2 %v1206_v2 }
 0x285   : > { %v1155_v3 = vpop.permute.xlu1 %1154  ;;  %v1176_v5 = vld [vmem:[#allocation4 + $0x8] sm:$0xf] }
 0x286   : > { %1158 = vst.msk [vmem:[#allocation3 + $0xc] sm:$0xf] %vm1113_vm9, %v1155_v3  ;;  %2406 = vmatmul.msk.bf16.vlgmr.msra.gmra.mxu2 %vm1182_vm10, %v1171_v4  ;;  %v1225_v6 = vsel %vm1182_vm10, %v1176_v5, 0 }
 0x287   : > { %1234 = vmatpush.bf16.xpose.msra.mxu3 %v1225_v6 }
 0x28d   : > { %v1173_v8 = vld [vmem:[#allocation3 + $0xc] sm:$0xf] }
 0x28e   : > { %2407 = vmatmul.msk.bf16.vlgmr.msra.gmra.mxu3 %vm1182_vm10, %v1172_v7  ;;  %2408 = vmatmul.msk.bf16.vlgmr.msrb.gmra.mxu0 %vm1182_vm10, %v1173_v8 }
 0x2fa   : > { %v1198_v10 = vpop.f32.mrf.mxu1 }
 0x2fb   : > { %v1199_v24 = vadd.f32 %v1198_v10, %v1169_v12 }
 0x2fd   : > { %v1259_v26 = vsel %vm1182_vm10, %v1199_v24, -inf }
 0x302   : > { %v1200_v11 = vpop.f32.mrf.mxu1 }
 0x309   : > { %v1217_v13 = vpop.f32.mrf.mxu2 }
 0x30a   : > { %v1218_v14 = vadd.f32 %v1217_v13, %v1169_v12 }
 0x30b   : > { %v1255_v15 = vpop.f32.mrf.mxu0 }
 0x30c   : > { %v1256_v16 = vadd.f32 %v1255_v15, %v1169_v12  ;;  %v1262_v17 = vsel %vm1182_vm10, %v1218_v14, -inf }
 0x30d   : > { %1263 = vmax.xlane.f32.xlu1 %v1262_v17 }
 0x30e   : > { %v1268_v18 = vsel %vm1182_vm10, %v1256_v16, -inf }
 0x30f   : > { %1269 = vmax.xlane.f32.xlu0 %v1268_v18 }
 0x311   : > { %v1219_v19 = vpop.f32.mrf.mxu2  ;;  %v1236_v20 = vpop.f32.mrf.mxu3 }
 0x312   : > { %v1237_v21 = vadd.f32 %v1236_v20, %v1169_v12 }
 0x313   : > { %v1257_v22 = vpop.f32.mrf.mxu0 }
 0x314   : > { %v1265_v23 = vsel %vm1182_vm10, %v1237_v21, -inf }
 0x315   : > { %1266 = vmax.xlane.f32.xlu2 %v1265_v23 }
 0x319   : > { %v1238_v25 = vpop.f32.mrf.mxu3 }
 0x31d   : > { %1260 = vmax.xlane.f32.xlu2 %v1259_v26 }
 0x323   : > { %1149 = vrot.lane.b32.xlu0 %v3084_v51, %s2760_s26  ;;  %s3460_s26 = sld [smem:[#allocation26_spill]] }
 0x326   : > { %1134 = vrot.lane.b32.xlu1 %v3084_v51, %s2761_s25 }
 0x32b   : > { %1120 = vrot.lane.b32.xlu0 %v3084_v51, %s2762_s6  ;;  %s3461_s6 = sld [smem:[#allocation41_spill]] }
 0x380   : > { %v1264_v27 = vpop.xlane.xlu1 %1263 }
 0x381   : > { %v1272_v28 = vsub.f32 %v1218_v14, %v1264_v27  ;;  %v2498_v27 = vld [vmem:[%s3005_s16 + $0x8] sm:$0xff] }
 0x382   : > { %v1270_v29 = vpop.xlane.xlu0 %1269 }
 0x383   : > { %v1277_v30 = vmul.f32 1.442695, %v1272_v28  ;;  %v1274_v31 = vsub.f32 %v1256_v16, %v1270_v29  ;;  %v2497_v28 = vld [vmem:[%s3005_s16] sm:$0xff]  ;;  %s3457_s16 = sld [smem:[#allocation37_spill]] }
 0x385   : > { %2610 = vpow2.f32 %v1277_v30  ;;  %v1281_v33 = vmul.f32 1.442695, %v1274_v31 }
 0x387   : > { %2612 = vpow2.f32 %v1281_v33 }
 0x388   : > { %v1267_v34 = vpop.xlane.xlu2 %1266 }
 0x389   : > { %v1273_v35 = vsub.f32 %v1237_v21, %v1267_v34  ;;  %s3458_s19 = scalar_lea.vmem %s3457_s16, %s2960_s3  ;;  %s3463_s16 = sld [smem:[#allocation39_spill]] }
 0x38a   : > { %v2598_v34 = vld [vmem:[%s3458_s19] ss:$0 sm:$0xff] }
 0x38b   : > { %v2611_v36 = vpop.eup %2610  ;;  %v1279_v37 = vmul.f32 1.442695, %v1273_v35 }
 0x38c   : > { %v1286_v39 = vsel %vm1182_vm10, %v2611_v36, 0.0 }
 0x38d   : > { %v2613_v40 = vpop.eup %2612  ;;  %2614 = vpow2.f32 %v1279_v37  ;;  %1287 = vadd.xlane.f32.xlu2 %v1286_v39 }
 0x38e   : > { %v1292_v41 = vsel %vm1182_vm10, %v2613_v40, 0.0 }
 0x38f   : > { %1293 = vadd.xlane.f32.xlu1 %v1292_v41  ;;  %s3464_s19 = scalar_lea.vmem %s3463_s16, %s2960_s3 }
 0x390   : > { %v1261_v42 = vpop.xlane.xlu2 %1260 }
 0x391   : > { %v1271_v43 = vsub.f32 %v1199_v24, %v1261_v42 }
 0x393   : > { %v2615_v44 = vpop.eup %2614  ;;  %v1275_v45 = vmul.f32 1.442695, %v1271_v43 }
 0x394   : > { %v1289_v46 = vsel %vm1182_vm10, %v2615_v44, 0.0 }
 0x395   : > { %2616 = vpow2.f32 %v1275_v45  ;;  %v1150_v47 = vpop.permute.xlu0 %1149  ;;  %1290 = vadd.xlane.f32.xlu2 %v1289_v46  ;;  %v2502_v46 = vld [vmem:[%s3023_s17 + $0x8] sm:$0xff] }
 0x396   : > { %1153 = vst.msk [vmem:[#allocation5 + $0x8] sm:$0xf] %vm1113_vm9, %v1150_v47  ;;  %v2500_v47 = vld [vmem:[%s3459_s30 + $0x8] sm:$0xff] }
 0x398   : > { %v1135_v48 = vpop.permute.xlu1 %1134 }
 0x399   : > { %1138 = vst.msk [vmem:[#allocation5 + $0x4] sm:$0xf] %vm1113_vm9, %v1135_v48  ;;  %v2499_v48 = vld [vmem:[%s3459_s30] sm:$0xff] }
 0x39b   : > { %v2617_v49 = vpop.eup %2616 }
 0x39c   : > { %v1283_v50 = vsel %vm1182_vm10, %v2617_v49, 0.0 }
 0x39d   : > { %v1121_v52 = vpop.permute.xlu0 %1120  ;;  %1284 = vadd.xlane.f32.xlu0 %v1283_v50  ;;  %v1180_v53 = vld [vmem:[#allocation5 + $0x8] sm:$0xf] }
 0x39e   : > { %1123 = vst.msk [vmem:[#allocation5] sm:$0xf] %vm1113_vm9, %v1121_v52  ;;  %v1350_v54 = vsel %vm1310_vm11, %v1180_v53, 0 }
 0x39f   : > { %1359 = vmatpush.bf16.msrb.mxu3 %v1350_v54 }
 0x3a0   : > { %v1179_v55 = vld [vmem:[#allocation5 + $0x4] sm:$0xf] }
 0x3a1   : > { %v1331_v56 = vsel %vm1310_vm11, %v1179_v55, 0 }
 0x3a2   : > { %1340 = vmatpush.bf16.msrb.mxu2 %v1331_v56 }
 0x3a3   : > { %1555 = vmatpush.bf16.msra.mxu3 %v2502_v46 }
 0x3a5   : > { %v1178_v57 = vld [vmem:[#allocation5] sm:$0xf] }
 0x3a6   : > { %v1312_v58 = vsel %vm1310_vm11, %v1178_v57, 0  ;;  %1518 = vmatpush.bf16.msra.mxu2 %v2500_v47 }
 0x3a7   : > { %1321 = vmatpush.bf16.msrb.mxu1 %v1312_v58 }
 0x3aa   : > { %1519 = vmatpush.bf16.msra.mxu2 %v2499_v48 }
 0x3ab   : > { %1433 = vmatpush.bf16.msra.mxu1 %v2498_v27 }
 0x3ad   : > { %1164 = vrot.lane.b32.xlu2 %v3084_v51, %s2763_s1  ;;  %s3462_s1 = scalar_lea.vmem %s3461_s6, %s2960_s3 }
 0x3af   : > { %1434 = vmatpush.bf16.msra.mxu1 %v2497_v28 }
 0x400   : > { %v1288_v59 = vpop.xlane.xlu2 %1287 }
 0x401   : > { %2618 = vrcp.f32 %v1288_v59 }
 0x402   : > { %v1294_v0 = vpop.xlane.xlu1 %1293 }
 0x407   : > { %v2619_v60 = vpop.eup %2618 }
 0x408   : > { %v1300_v61 = vmul.f32 %v2619_v60, %v2611_v36  ;;  %v1291_v62 = vpop.xlane.xlu2 %1290 }
 0x409   : > { %2620 = vrcp.f32 %v1291_v62 }
 0x40a   : > { %v1304_v63 = vpack.c.bf16 %v1300_v61, %v1300_v61  ;;  %2622 = vrcp.f32 %v1294_v0 }
 0x40c   : > { %2410 = vmatmul.msk.bf16.vlgmr.msrb.gmra.mxu2 %vm1182_vm10, %v1304_v63 }
 0x40f   : > { %v2621_v2 = vpop.eup %2620 }
 0x410   : > { %v1301_v3 = vmul.f32 %v2621_v2, %v2615_v44  ;;  %v1285_v4 = vpop.xlane.xlu0 %1284  ;;  %v1165_v5 = vpop.permute.xlu2 %1164 }
 0x411   : > { %2624 = vrcp.f32 %v1285_v4  ;;  %1168 = vst.msk [vmem:[#allocation5 + $0xc] sm:$0xf] %vm1113_vm9, %v1165_v5  ;;  %v2623_v51 = vpop.eup %2622  ;;  %v1456_v5 = vperm.slane %v3071_v32, 1 }
 0x412   : > { %v1305_v6 = vpack.c.bf16 %v1301_v3, %v1301_v3  ;;  %v1302_v8 = vmul.f32 %v2623_v51, %v2613_v40 }
 0x414   : > { %2411 = vmatmul.msk.bf16.vlgmr.msrb.gmra.mxu3 %vm1182_vm10, %v1305_v6  ;;  %v1306_v14 = vpack.c.bf16 %v1302_v8, %v1302_v8 }
 0x417   : > { %v2625_v7 = vpop.eup %2624 }
 0x418   : > { %v1299_v10 = vmul.f32 %v2625_v7, %v2617_v49  ;;  %v1181_v11 = vld [vmem:[#allocation5 + $0xc] sm:$0xf]  ;;  %v1525_v49 = vld [vmem:[%s3460_s26] sm:$0xf] }
 0x419   : > { %v1369_v12 = vsel %vm1310_vm11, %v1181_v11, 0 }
 0x41a   : > { %1378 = vmatpush.bf16.msra.mxu0 %v1369_v12  ;;  %v1303_v13 = vpack.c.bf16 %v1299_v10, %v1299_v10  ;;  %v1486_v10 = vperm.slane %v3075_v38, 1 }
 0x41c   : > { %2409 = vmatmul.msk.bf16.vlgmr.msrb.gmra.mxu1 %vm1182_vm10, %v1303_v13 }
 0x41d   : > { %2412 = vmatmul.msk.bf16.vlgmr.msra.gmra.mxu0 %vm1182_vm10, %v1306_v14 }
 0x48f   : > { %v1342_v15 = vpop.f32.mrf.mxu2 }
 0x490   : > { %v1386_v16 = vpack.c.bf16 %v1342_v15, %v1342_v15 }
 0x492   : > { %1388 = vrot.lane.b32.xlu2 %v1386_v16, %s2764_s8 }
 0x497   : > { %v1344_v17 = vpop.f32.mrf.mxu2  ;;  %v1361_v18 = vpop.f32.mrf.mxu3 }
 0x498   : > { %v1393_v19 = vpack.c.bf16 %v1361_v18, %v1361_v18  ;;  %v2599_v17 = vld [vmem:[%s3462_s1] ss:$0 sm:$0xff] }
 0x499   : > { %v1323_v20 = vpop.f32.mrf.mxu1 }
 0x49a   : > { %v1384_v21 = vpack.c.bf16 %v1323_v20, %v1323_v20  ;;  %1395 = vrot.lane.b32.xlu2 %v1393_v19, %s2765_s12  ;;  %v1380_v22 = vpop.f32.mrf.mxu0 }
 0x49b   : > { %v1400_v24 = vpack.c.bf16 %v1380_v22, %v1380_v22 }
 0x49c   : > { %1385 = vst.msk [vmem:[#allocation8] sm:$0xf] %vm1113_vm9, %v1384_v21 }
 0x49f   : > { %v1363_v23 = vpop.f32.mrf.mxu3 }
 0x4a1   : > { %v1325_v25 = vpop.f32.mrf.mxu1 }
 0x4a2   : > { %1402 = vrot.lane.b32.xlu2 %v1400_v24, %s2766_s13  ;;  %v1382_v26 = vpop.f32.mrf.mxu0  ;;  %v2600_v24 = vld [vmem:[%s3464_s19] ss:$0 sm:$0xff] }
 0x4ec   : > { %v1389_v29 = vpop.permute.xlu2 %1388 }
 0x4ed   : > { %1392 = vst.msk [vmem:[#allocation8] sm:$0xf] %vm1391_vm12, %v1389_v29 }
 0x4f4   : > { %v1396_v30 = vpop.permute.xlu2 %1395 }
 0x4f5   : > { %1399 = vst.msk [vmem:[#allocation8] sm:$0xf] %vm1398_vm13, %v1396_v30 }
 0x4fc   : > { %v1403_v31 = vpop.permute.xlu2 %1402 }
 0x4fd   : > { %1406 = vst.msk [vmem:[#allocation8] sm:$0xf] %vm1405_vm14, %v1403_v31 }
 0x504   : > { %v1407_v33 = vld [vmem:[#allocation8] sm:$0xf] }
 0x505   : > { %2421 = vmatmul.msk.bf16.vlgmr.msra.gmra.mxu1 %vm1025_vm1, %v1407_v33 }
 0x582   : > { %v1436_v35 = vpop.f32.mrf.mxu1 }
 0x583   : > { %v1440_v36 = vadd.f32 %v1436_v35, %v3059_v1  ;;  %v2501_v1 = vld [vmem:[%s3023_s17] sm:$0xff] }
 0x584   : > { %1556 = vmatpush.bf16.msra.mxu3 %v2501_v1 }
 0x585   : > { %v3162_v37 = vadd.f32 %v2598_v34, %v1440_v36 }
 0x587   : > { %v1446_v39 = vsel %vm1025_vm1, %v3162_v37, 0.0  ;;  %2439 = vmatmul.msk.bf16.vlgmr.msra.gmra.mxu3 %vm1025_vm1, %v1525_v49 }
 0x588   : > { %1447 = vadd.xlane.f32.xlu1 %v1446_v39 }
 0x58a   : > { %v1438_v40 = vpop.f32.mrf.mxu1 }
 0x5fb   : > { %v1448_v41 = vpop.xlane.xlu1 %1447 }
 0x5fc   : > { %v1449_v42 = vmul.f32 %v1448_v41, %v3063_v9 }
 0x5fe   : > { %v1450_v43 = vsub.f32 %v3162_v37, %v1449_v42 }
 0x600   : > { %v1451_v44 = vmul.f32 %v1450_v43, %v1450_v43  ;;  %v1457_v11 = vmul.f32 %v1456_v5, %v1450_v43 }
 0x602   : > { %v1452_v45 = vsel %vm1025_vm1, %v1451_v44, 0.0 }
 0x603   : > { %1453 = vadd.xlane.f32.xlu2 %v1452_v45 }
 0x60a   : > { %v1558_v18 = vpop.f32.mrf.mxu3 }
 0x60b   : > { %v1559_v19 = vadd.f32 %v2599_v17, %v1558_v18 }
 0x60d   : > { %v3183_v20 = vpack.c.bf16 %v1559_v19, %v1559_v19 }
 0x60f   : > { %1565 = vst.msk [vmem:[#allocation6] sm:$0xf] %vm1113_vm9, %v3183_v20  ;;  %1604 = vrot.lane.b32.xlu0 %v3183_v20, %s2759_s2  ;;  %1590 = vrot.lane.b32.xlu1 %v3183_v20, %s2756_s29 }
 0x612   : > { %v1560_v21 = vpop.f32.mrf.mxu3 }
 0x616   : > { %v1619_v22 = vld [vmem:[#allocation6] sm:$0xf] }
 0x617   : > { %v1631_v23 = vsel %vm1182_vm10, %v1619_v22, 0 }
 0x618   : > { %1640 = vmatpush.bf16.xpose.msrb.mxu0 %v1631_v23 }
 0x676   : > { %v1454_v50 = vpop.xlane.xlu2 %1453 }
 0x677   : > { %v1455_v52 = vmul.f32 0.032258064, %v1454_v50 }
 0x679   : > { %2626 = vrsqrt.f32 %v1455_v52  ;;  %vm1465_vm15 = vcmp.eq.f32.partialorder %v1455_v52, inf  ;;  %v1468_v60 = vand.u32 2147483648, %v1455_v52  ;;  %vm1467_vm0 = vcmp.eq.f32.partialorder %v1455_v52, 0.0 }
 0x67f   : > { %v2627_v53 = vpop.eup %2626 }
 0x680   : > { %v1459_v54 = vmul.f32 %v2627_v53, %v1455_v52 }
 0x681   : > { %v1605_v30 = vpop.permute.xlu0 %1604  ;;  %v1591_v31 = vpop.permute.xlu1 %1590 }
 0x682   : > { %v1460_v55 = vmul.f32 %v2627_v53, %v1459_v54  ;;  %1608 = vst.msk [vmem:[#allocation6 + $0xc] sm:$0xf] %vm1113_vm9, %v1605_v30 }
 0x683   : > { %1594 = vst.msk [vmem:[#allocation6 + $0x8] sm:$0xf] %vm1113_vm9, %v1591_v31 }
 0x684   : > { %v1461_v56 = vmul.f32 0.5, %v1460_v55 }
 0x686   : > { %v1462_v57 = vsub.f32 1.5, %v1461_v56 }
 0x688   : > { %v1463_v58 = vmul.f32 %v2627_v53, %v1462_v57 }
 0x689   : > { %v1622_v34 = vld [vmem:[#allocation6 + $0xc] sm:$0xf] }
 0x68a   : > { %v1464_v59 = vmul.f32 %v1463_v58, %v1455_v52  ;;  %v1621_v33 = vld [vmem:[#allocation6 + $0x8] sm:$0xf]  ;;  %v1688_v36 = vsel %vm1182_vm10, %v1622_v34, 0 }
 0x68b   : > { %v1669_v35 = vsel %vm1182_vm10, %v1621_v33, 0  ;;  %1697 = vmatpush.bf16.xpose.msrb.mxu3 %v1688_v36 }
 0x68c   : > { %v1466_v61 = vsel %vm1465_vm15, %v1455_v52, %v1464_v59  ;;  %1678 = vmatpush.bf16.xpose.msrb.mxu2 %v1669_v35 }
 0x68d   : > { %v1469_v62 = vsel %vm1467_vm0, %v1468_v60, %v1466_v61 }
 0x68e   : > { %v1470_v63 = vadd.f32 1e-06, %v1469_v62 }
 0x690   : > { %2628 = vrcp.f32 %v1470_v63  ;;  %v1482_v4 = vand.u32 2147483648, %v1470_v63  ;;  %v1480_v51 = vand.u32 2147483647, %v1470_v63  ;;  %vm1476_vm3 = vweird.f32 %v1470_v63 }
 0x692   : > { %v1483_v8 = vor.u32 1.1754944e-38, %v1482_v4  ;;  %vm1481_vm5 = vcmp.eq.f32.partialorder %v1480_v51, 8.507059e+37 }
 0x696   : > { %v2629_v0 = vpop.eup %2628 }
 0x697   : > { %v1472_v2 = vmul.f32 %v2629_v0, %v1470_v63  ;;  %vm1477_vm2 = vweird.f32 %v2629_v0 }
 0x698   : > { %vm1478_vm4 = vmor %vm1476_vm3, %vm1477_vm2 }
 0x699   : > { %v1473_v3 = vsub.f32 1.0, %v1472_v2 }
 0x69b   : > { %v1474_v6 = vmul.f32 %v2629_v0, %v1473_v3 }
 0x69d   : > { %v1475_v7 = vadd.f32 %v2629_v0, %v1474_v6 }
 0x69f   : > { %v1479_v12 = vsel %vm1478_vm4, %v2629_v0, %v1475_v7 }
 0x6a0   : > { %v1484_v13 = vsel %vm1481_vm5, %v1483_v8, %v1479_v12 }
 0x6a1   : > { %v1485_v14 = vmul.f32 %v1484_v13, %v1457_v11 }
 0x6a3   : > { %v1487_v15 = vadd.f32 %v1486_v10, %v1485_v14 }
 0x6a5   : > { %v1488_v16 = vpack.c.bf16 %v1487_v15, %v1487_v15 }
 0x6a7   : > { %2430 = vmatmul.msk.bf16.vlgmr.msra.gmra.mxu2 %vm1025_vm1, %v1488_v16 }
 0x72a   : > { %v1521_v25 = vpop.f32.mrf.mxu2 }
 0x72b   : > { %v1522_v26 = vadd.f32 %v2600_v24, %v1521_v25 }
 0x72d   : > { %v1562_v27 = vpack.c.bf16 %v1522_v26, %v1522_v26 }
 0x72f   : > { %1563 = vst.msk [vmem:[#allocation3] sm:$0xf] %vm1113_vm9, %v1562_v27  ;;  %1600 = vrot.lane.b32.xlu0 %v1562_v27, %s2759_s2  ;;  %1586 = vrot.lane.b32.xlu1 %v1562_v27, %s2756_s29  ;;  %s3465_s2 = sld [smem:[#allocation32_spill]] }
 0x732   : > { %v1523_v28 = vpop.f32.mrf.mxu2 }
 0x735   : > { %s3466_s30 = scalar_lea.vmem %s3465_s2, %s3454_s4 }
 0x736   : > { %v1615_v29 = vld [vmem:[#allocation3] sm:$0xf]  ;;  %v1614_v1 = vld [vmem:[%s3466_s30] sm:$0xff] }
 0x737   : > { %1572 = vrot.lane.b32.xlu0 %v1562_v27, %s2754_s24  ;;  %1576 = vrot.lane.b32.xlu1 %v3183_v20, %s2754_s24 }
 0x738   : > { %2440 = vmatmul.msk.bf16.vlgmr.msrb.gmra.mxu0 %vm1182_vm10, %v1615_v29 }
 0x7a1   : > { %v1601_v39 = vpop.permute.xlu0 %1600  ;;  %v1587_v40 = vpop.permute.xlu1 %1586 }
 0x7a2   : > { %1603 = vst.msk [vmem:[#allocation3 + $0xc] sm:$0xf] %vm1113_vm9, %v1601_v39 }
 0x7a3   : > { %1589 = vst.msk [vmem:[#allocation3 + $0x8] sm:$0xf] %vm1113_vm9, %v1587_v40 }
 0x7a9   : > { %v1573_v41 = vpop.permute.xlu0 %1572  ;;  %v1577_v42 = vpop.permute.xlu1 %1576  ;;  %v1618_v43 = vld [vmem:[#allocation3 + $0xc] sm:$0xf] }
 0x7aa   : > { %1575 = vst.msk [vmem:[#allocation3 + $0x4] sm:$0xf] %vm1113_vm9, %v1573_v41  ;;  %v1617_v44 = vld [vmem:[#allocation3 + $0x8] sm:$0xf]  ;;  %2443 = vmatmul.msk.bf16.vlgmr.msrb.gmra.mxu3 %vm1182_vm10, %v1618_v43 }
 0x7ab   : > { %1580 = vst.msk [vmem:[#allocation6 + $0x4] sm:$0xf] %vm1113_vm9, %v1577_v42  ;;  %2442 = vmatmul.msk.bf16.vlgmr.msrb.gmra.mxu2 %vm1182_vm10, %v1617_v44 }
 0x7b1   : > { %v1616_v50 = vld [vmem:[#allocation3 + $0x4] sm:$0xf] }
 0x7b2   : > { %v1620_v45 = vld [vmem:[#allocation6 + $0x4] sm:$0xf] }
 0x7b3   : > { %v1650_v46 = vsel %vm1182_vm10, %v1620_v45, 0 }
 0x7b4   : > { %1659 = vmatpush.bf16.xpose.msrb.mxu1 %v1650_v46 }
 0x7b5   : > { %v1642_v47 = vpop.f32.mrf.mxu0 }
 0x7b6   : > { %v1643_v48 = vadd.f32 %v1642_v47, %v1614_v1 }
 0x7b8   : > { %v1703_v49 = vsel %vm1182_vm10, %v1643_v48, -inf }
 0x7b9   : > { %1704 = vmax.xlane.f32.xlu2 %v1703_v49 }
 0x7bb   : > { %2441 = vmatmul.msk.bf16.vlgmr.msrb.gmra.mxu1 %vm1182_vm10, %v1616_v50 }
 0x7bd   : > { %v1644_v52 = vpop.f32.mrf.mxu0 }
 0x82c   : > { %v1705_v2 = vpop.xlane.xlu2 %1704 }
 0x82d   : > { %v1699_v53 = vpop.f32.mrf.mxu3  ;;  %v1715_v7 = vsub.f32 %v1643_v48, %v1705_v2 }
 0x82e   : > { %v1680_v54 = vpop.f32.mrf.mxu2  ;;  %v1700_v55 = vadd.f32 %v1699_v53, %v1614_v1 }
 0x82f   : > { %v1681_v56 = vadd.f32 %v1680_v54, %v1614_v1  ;;  %v1719_v10 = vmul.f32 1.442695, %v1715_v7  ;;  %v2601_v7 = vld [vmem:[%s997_s10] ss:$0 sm:$0xff] }
 0x830   : > { %v1712_v57 = vsel %vm1182_vm10, %v1700_v55, -inf }
 0x831   : > { %1713 = vmax.xlane.f32.xlu1 %v1712_v57  ;;  %v1709_v58 = vsel %vm1182_vm10, %v1681_v56, -inf }
 0x832   : > { %1710 = vmax.xlane.f32.xlu2 %v1709_v58 }
 0x835   : > { %v1701_v59 = vpop.f32.mrf.mxu3 }
 0x836   : > { %v1682_v60 = vpop.f32.mrf.mxu2 }
 0x838   : > { %v1661_v61 = vpop.f32.mrf.mxu1 }
 0x839   : > { %v1662_v62 = vadd.f32 %v1661_v61, %v1614_v1 }
 0x83b   : > { %v1706_v63 = vsel %vm1182_vm10, %v1662_v62, -inf }
 0x83c   : > { %1707 = vmax.xlane.f32.xlu0 %v1706_v63 }
 0x840   : > { %v1663_v0 = vpop.f32.mrf.mxu1 }
 0x84a   : > { %1595 = vrot.lane.b32.xlu2 %v3183_v20, %s2757_s28  ;;  %1609 = vrot.lane.b32.xlu1 %v3183_v20, %s2753_s14  ;;  %s3467_s14 = sld [smem:[#allocation28_spill]] }
 0x850   : > { %1581 = vrot.lane.b32.xlu0 %v3183_v20, %s2755_s23  ;;  %v2504_v2 = vld [vmem:[%s3467_s14 + $0x8] sm:$0xff] }
 0x8a4   : > { %v1714_v3 = vpop.xlane.xlu1 %1713 }
 0x8a5   : > { %v1711_v4 = vpop.xlane.xlu2 %1710  ;;  %v1718_v5 = vsub.f32 %v1700_v55, %v1714_v3  ;;  %v2503_v3 = vld [vmem:[%s3467_s14] sm:$0xff] }
 0x8a6   : > { %v1717_v6 = vsub.f32 %v1681_v56, %v1711_v4 }
 0x8a7   : > { %v1725_v51 = vmul.f32 1.442695, %v1718_v5 }
 0x8a8   : > { %v1723_v8 = vmul.f32 1.442695, %v1717_v6 }
 0x8a9   : > { %2630 = vpow2.f32 %v1725_v51 }
 0x8aa   : > { %2632 = vpow2.f32 %v1723_v8 }
 0x8ab   : > { %2634 = vpow2.f32 %v1719_v10 }
 0x8ad   : > { %v1596_v11 = vpop.permute.xlu2 %1595 }
 0x8ae   : > { %1599 = vst.msk [vmem:[#allocation7 + $0x8] sm:$0xf] %vm1113_vm9, %v1596_v11 }
 0x8af   : > { %v2631_v12 = vpop.eup %2630  ;;  %v1708_v13 = vpop.xlane.xlu0 %1707 }
 0x8b0   : > { %v2633_v14 = vpop.eup %2632  ;;  %v1716_v15 = vsub.f32 %v1662_v62, %v1708_v13  ;;  %v1736_v16 = vsel %vm1182_vm10, %v2631_v12, 0.0 }
 0x8b1   : > { %v1733_v17 = vsel %vm1182_vm10, %v2633_v14, 0.0  ;;  %1737 = vadd.xlane.f32.xlu0 %v1736_v16  ;;  %v2635_v21 = vpop.eup %2634 }
 0x8b2   : > { %v1721_v18 = vmul.f32 1.442695, %v1716_v15  ;;  %1734 = vadd.xlane.f32.xlu2 %v1733_v17  ;;  %v1727_v23 = vsel %vm1182_vm10, %v2635_v21, 0.0 }
 0x8b4   : > { %2636 = vpow2.f32 %v1721_v18 }
 0x8b5   : > { %v1625_v19 = vld [vmem:[#allocation7 + $0x8] sm:$0xf] }
 0x8b6   : > { %v1793_v22 = vsel %vm1310_vm11, %v1625_v19, 0  ;;  %v2506_v19 = vld [vmem:[%s3041_s11 + $0x8] sm:$0xff] }
 0x8b7   : > { %1802 = vmatpush.bf16.msra.mxu2 %v1793_v22 }
 0x8ba   : > { %v2637_v24 = vpop.eup %2636  ;;  %1728 = vadd.xlane.f32.xlu2 %v1727_v23 }
 0x8bb   : > { %v1730_v25 = vsel %vm1182_vm10, %v2637_v24, 0.0 }
 0x8bc   : > { %1731 = vadd.xlane.f32.xlu1 %v1730_v25  ;;  %v1610_v26 = vpop.permute.xlu1 %1609 }
 0x8bd   : > { %1613 = vst.msk [vmem:[#allocation7 + $0xc] sm:$0xf] %vm1113_vm9, %v1610_v26 }
 0x8c2   : > { %v1582_v27 = vpop.permute.xlu0 %1581 }
 0x8c3   : > { %1585 = vst.msk [vmem:[#allocation7 + $0x4] sm:$0xf] %vm1113_vm9, %v1582_v27 }
 0x8c4   : > { %v1626_v28 = vld [vmem:[#allocation7 + $0xc] sm:$0xf] }
 0x8c5   : > { %1567 = vrot.lane.b32.xlu0 %v3183_v20, %s2758_s18  ;;  %v1812_v29 = vsel %vm1310_vm11, %v1626_v28, 0  ;;  %v2510_v28 = vld [vmem:[%s3055_s9 + $0x18] sm:$0xff] }
 0x8c6   : > { %1821 = vmatpush.bf16.msra.mxu3 %v1812_v29  ;;  %2007 = vmatpush.bf16.msrb.mxu2 %v2510_v28 }
 0x8ca   : > { %v1624_v30 = vld [vmem:[#allocation7 + $0x4] sm:$0xf] }
 0x8cb   : > { %v1774_v31 = vsel %vm1310_vm11, %v1624_v30, 0  ;;  %v2509_v30 = vld [vmem:[%s3055_s9 + $0x10] sm:$0xff] }
 0x8cc   : > { %1783 = vmatpush.bf16.msra.mxu1 %v1774_v31  ;;  %2008 = vmatpush.bf16.msrb.mxu2 %v2509_v30 }
 0x8d0   : > { %1958 = vmatpush.bf16.msrb.mxu1 %v2506_v19 }
 0x924   : > { %v1738_v33 = vpop.xlane.xlu0 %1737 }
 0x925   : > { %v1735_v34 = vpop.xlane.xlu2 %1734  ;;  %2638 = vrcp.f32 %v1738_v33 }
 0x926   : > { %2640 = vrcp.f32 %v1735_v34 }
 0x92b   : > { %v2639_v35 = vpop.eup %2638 }
 0x92c   : > { %v2641_v36 = vpop.eup %2640  ;;  %v1746_v39 = vmul.f32 %v2639_v35, %v2631_v12 }
 0x92d   : > { %v1745_v40 = vmul.f32 %v2641_v36, %v2633_v14  ;;  %v1729_v20 = vpop.xlane.xlu2 %1728 }
 0x92e   : > { %v1750_v41 = vpack.c.bf16 %v1746_v39, %v1746_v39 }
 0x92f   : > { %v1749_v42 = vpack.c.bf16 %v1745_v40, %v1745_v40  ;;  %v1732_v43 = vpop.xlane.xlu1 %1731 }
 0x930   : > { %2642 = vrcp.f32 %v1732_v43  ;;  %2447 = vmatmul.msk.bf16.vlgmr.msra.gmra.mxu3 %vm1182_vm10, %v1750_v41  ;;  %v1896_v43 = vperm.slane %v3071_v32, 2 }
 0x931   : > { %2446 = vmatmul.msk.bf16.vlgmr.msra.gmra.mxu2 %vm1182_vm10, %v1749_v42  ;;  %2644 = vrcp.f32 %v1729_v20 }
 0x936   : > { %v2643_v44 = vpop.eup %2642 }
 0x937   : > { %v1744_v45 = vmul.f32 %v2643_v44, %v2637_v24  ;;  %v1568_v46 = vpop.permute.xlu0 %1567  ;;  %v2645_v47 = vpop.eup %2644 }
 0x938   : > { %1570 = vst.msk [vmem:[#allocation7] sm:$0xf] %vm1113_vm9, %v1568_v46  ;;  %v1743_v48 = vmul.f32 %v2645_v47, %v2635_v21 }
 0x939   : > { %v1748_v1 = vpack.c.bf16 %v1744_v45, %v1744_v45 }
 0x93a   : > { %v1747_v52 = vpack.c.bf16 %v1743_v48, %v1743_v48 }
 0x93b   : > { %2445 = vmatmul.msk.bf16.vlgmr.msra.gmra.mxu1 %vm1182_vm10, %v1748_v1  ;;  %v1926_v1 = vperm.slane %v3075_v38, 2 }
 0x93f   : > { %v1623_v49 = vld [vmem:[#allocation7] sm:$0xf] }
 0x940   : > { %v1755_v50 = vsel %vm1310_vm11, %v1623_v49, 0 }
 0x941   : > { %1764 = vmatpush.bf16.msra.mxu0 %v1755_v50 }
 0x944   : > { %2444 = vmatmul.msk.bf16.vlgmr.msra.gmra.mxu0 %vm1182_vm10, %v1747_v52 }
 0x945   : > { %1873 = vmatpush.bf16.msrb.mxu0 %v2504_v2 }
 0x949   : > { %1874 = vmatpush.bf16.msrb.mxu0 %v2503_v3 }
 0x9b3   : > { %v1823_v53 = vpop.f32.mrf.mxu3 }
 0x9b4   : > { %v1804_v54 = vpop.f32.mrf.mxu2  ;;  %v1841_v61 = vpack.c.bf16 %v1823_v53, %v1823_v53  ;;  %v2508_v53 = vld [vmem:[%s3055_s9 + $0x8] sm:$0xff] }
 0x9b5   : > { %v1835_v55 = vpack.c.bf16 %v1804_v54, %v1804_v54  ;;  %2009 = vmatpush.bf16.msrb.mxu2 %v2508_v53  ;;  %v2507_v54 = vld [vmem:[%s3055_s9] sm:$0xff]  ;;  %s3470_s9 = sld [smem:[#allocation15_spill]] }
 0x9b7   : > { %1837 = vrot.lane.b32.xlu2 %v1835_v55, %s2765_s12  ;;  %v2602_v55 = vld [vmem:[%s1005_s5] ss:$0 sm:$0xff] }
 0x9b8   : > { %v1785_v56 = vpop.f32.mrf.mxu1 }
 0x9b9   : > { %v1829_v57 = vpack.c.bf16 %v1785_v56, %v1785_v56  ;;  %2010 = vmatpush.bf16.msrb.mxu2 %v2507_v54 }
 0x9bb   : > { %1831 = vrot.lane.b32.xlu0 %v1829_v57, %s2764_s8  ;;  %v1825_v58 = vpop.f32.mrf.mxu3  ;;  %p2483_p1 = scmp.ne.s32.totalorder %s3470_s9, 1 }
 0x9bc   : > { %v1806_v59 = vpop.f32.mrf.mxu2  ;;  %s3472_s17 = sld [smem:[#allocation48_spill]] (!%p2483_p1) }
 0x9c0   : > { %v1787_v60 = vpop.f32.mrf.mxu1 }
 0x9c1   : > { %v1766_v62 = vpop.f32.mrf.mxu0  ;;  %v2603_v60 = vld [vmem:[%s1013_s27] ss:$0 sm:$0xff]  ;;  %s3471_s27 = sld [smem:[#allocation47_spill]] (!%p2483_p1) }
 0x9c2   : > { %v1827_v63 = vpack.c.bf16 %v1766_v62, %v1766_v62 }
 0x9c3   : > { %1843 = vrot.lane.b32.xlu0 %v1841_v61, %s2766_s13 }
 0x9c4   : > { %1828 = vst.msk [vmem:[#allocation8] sm:$0xf] %vm1113_vm9, %v1827_v63 }
 0x9c9   : > { %v1768_v0 = vpop.f32.mrf.mxu0 }
 0xa11   : > { %v1838_v5 = vpop.permute.xlu2 %1837 }
 0xa2d   : > { %v1832_v4 = vpop.permute.xlu0 %1831 }
 0xa2e   : > { %1834 = vst.msk [vmem:[#allocation8] sm:$0xf] %vm1391_vm12, %v1832_v4  ;;  %vm1999_vm12 = vcmask 523264  }
 0xa2f   : > { %1840 = vst.msk [vmem:[#allocation8] sm:$0xf] %vm1398_vm13, %v1838_v5 }
 0xa35   : > { %v1844_v6 = vpop.permute.xlu0 %1843 }
 0xa36   : > { %1846 = vst.msk [vmem:[#allocation8] sm:$0xf] %vm1405_vm14, %v1844_v6 }
 0xa3d   : > { %v1847_v51 = vld [vmem:[#allocation8] sm:$0xf] }
 0xa3e   : > { %2456 = vmatmul.msk.bf16.vlgmr.msrb.gmra.mxu0 %vm1025_vm1, %v1847_v51 }
 0xabb   : > { %v1876_v8 = vpop.f32.mrf.mxu0 }
 0xabc   : > { %v1880_v10 = vadd.f32 %v1876_v8, %v3162_v37  ;;  %v2505_v37 = vld [vmem:[%s3041_s11] sm:$0xff] }
 0xabd   : > { %1959 = vmatpush.bf16.msrb.mxu1 %v2505_v37 }
 0xabe   : > { %v3265_v11 = vadd.f32 %v2601_v7, %v1880_v10 }
 0xac0   : > { %v1886_v12 = vsel %vm1025_vm1, %v3265_v11, 0.0 }
 0xac1   : > { %1887 = vadd.xlane.f32.xlu0 %v1886_v12 }
 0xac3   : > { %v1878_v13 = vpop.f32.mrf.mxu0 }
 0xb34   : > { %v1888_v14 = vpop.xlane.xlu0 %1887 }
 0xb35   : > { %v1889_v15 = vmul.f32 %v1888_v14, %v3063_v9 }
 0xb37   : > { %v1890_v16 = vsub.f32 %v3265_v11, %v1889_v15 }
 0xb39   : > { %v1891_v17 = vmul.f32 %v1890_v16, %v1890_v16  ;;  %v1897_v47 = vmul.f32 %v1896_v43, %v1890_v16 }
 0xb3b   : > { %v1892_v18 = vsel %vm1025_vm1, %v1891_v17, 0.0 }
 0xb3c   : > { %1893 = vadd.xlane.f32.xlu1 %v1892_v18 }
 0xbaf   : > { %v1894_v21 = vpop.xlane.xlu1 %1893 }
 0xbb0   : > { %v1895_v22 = vmul.f32 0.032258064, %v1894_v21 }
 0xbb2   : > { %2646 = vrsqrt.f32 %v1895_v22  ;;  %vm1905_vm6 = vcmp.eq.f32.partialorder %v1895_v22, inf  ;;  %v1908_v33 = vand.u32 2147483648, %v1895_v22  ;;  %vm1907_vm7 = vcmp.eq.f32.partialorder %v1895_v22, 0.0 }
 0xbb8   : > { %v2647_v23 = vpop.eup %2646 }
 0xbb9   : > { %v1899_v24 = vmul.f32 %v2647_v23, %v1895_v22 }
 0xbbb   : > { %v1900_v25 = vmul.f32 %v2647_v23, %v1899_v24 }
 0xbbd   : > { %v1901_v26 = vmul.f32 0.5, %v1900_v25 }
 0xbbf   : > { %v1902_v27 = vsub.f32 1.5, %v1901_v26 }
 0xbc1   : > { %v1903_v29 = vmul.f32 %v2647_v23, %v1902_v27 }
 0xbc3   : > { %v1904_v31 = vmul.f32 %v1903_v29, %v1895_v22 }
 0xbc5   : > { %v1906_v34 = vsel %vm1905_vm6, %v1895_v22, %v1904_v31 }
 0xbc6   : > { %v1909_v35 = vsel %vm1907_vm7, %v1908_v33, %v1906_v34 }
 0xbc7   : > { %v1910_v36 = vadd.f32 1e-06, %v1909_v35 }
 0xbc9   : > { %2648 = vrcp.f32 %v1910_v36  ;;  %v1922_v42 = vand.u32 2147483648, %v1910_v36  ;;  %v1920_v44 = vand.u32 2147483647, %v1910_v36  ;;  %vm1916_vm9 = vweird.f32 %v1910_v36 }
 0xbcb   : > { %v1923_v46 = vor.u32 1.1754944e-38, %v1922_v42  ;;  %vm1921_vm11 = vcmp.eq.f32.partialorder %v1920_v44, 8.507059e+37 }
 0xbcf   : > { %v2649_v39 = vpop.eup %2648 }
 0xbd0   : > { %v1912_v40 = vmul.f32 %v2649_v39, %v1910_v36  ;;  %vm1917_vm8 = vweird.f32 %v2649_v39 }
 0xbd1   : > { %vm1918_vm10 = vmor %vm1916_vm9, %vm1917_vm8 }
 0xbd2   : > { %v1913_v41 = vsub.f32 1.0, %v1912_v40 }
 0xbd4   : > { %v1914_v20 = vmul.f32 %v2649_v39, %v1913_v41 }
 0xbd6   : > { %v1915_v45 = vadd.f32 %v2649_v39, %v1914_v20 }
 0xbd8   : > { %v1919_v48 = vsel %vm1918_vm10, %v2649_v39, %v1915_v45 }
 0xbd9   : > { %v1924_v49 = vsel %vm1921_vm11, %v1923_v46, %v1919_v48 }
 0xbda   : > { %v1925_v50 = vmul.f32 %v1924_v49, %v1897_v47 }
 0xbdc   : > { %v1927_v52 = vadd.f32 %v1926_v1, %v1925_v50 }
 0xbde   : > { %v1928_v32 = vpack.c.bf16 %v1927_v52, %v1927_v52 }
 0xbe0   : > { %2465 = vmatmul.msk.bf16.vlgmr.msrb.gmra.mxu1 %vm1025_vm1, %v1928_v32 }
 0xc5d   : > { %v1961_v38 = vpop.f32.mrf.mxu1 }
 0xc5e   : > { %v1962_v56 = vadd.f32 %v2602_v55, %v1961_v38 }
 0xc60   : > { %v1965_v57 = vmax.f32 %v1962_v56, 0.0 }
 0xc62   : > { %v1966_v58 = vpack.c.bf16 %v1965_v57, %v1965_v57 }
 0xc64   : > { %2482 = vmatmul.msk.bf16.vlgmr.msrb.gmra.mxu2 %vm1999_vm12, %v1966_v58 }
 0xc65   : > { %v1963_v59 = vpop.f32.mrf.mxu1 }
 0xce7   : > { %v2012_v61 = vpop.f32.mrf.mxu2 }
 0xce8   : > { %v2016_v62 = vadd.f32 %v2012_v61, %v3265_v11 }
 0xcea   : > { %v2021_v63 = vadd.f32 %v2603_v60, %v2016_v62 }
 0xceb   : > { %2026 = sbr.rel (%p2483_p1) target bundleno = 3599 (0xe0f), region = 116 }
 0xcec   : > { %2022 = vst.msk [vmem:[#allocation2] sm:$0xff] %vm1025_vm1, %v2021_v63 }
 0xcef   : > { %v2014_v0 = vpop.f32.mrf.mxu2 }
 0xcf0   : > { %v2029_v2 = vsel %vm1025_vm1, %v2021_v63, 0.0  ;;  %v2650_v24 = vld [vmem:[%s3471_s27] ss:$0 sm:$0xff] }
 0xcf1   : > { %2030 = vadd.xlane.f32.xlu0 %v2029_v2  ;;  %v2651_v31 = vld [vmem:[%s3472_s17] ss:$0 sm:$0xff] }
 0xd64   : > { %v2031_v3 = vpop.xlane.xlu0 %2030 }
 0xd65   : > { %v2032_v4 = vmul.f32 %v2031_v3, %v3063_v9 }
 0xd67   : > { %v2033_v5 = vsub.f32 %v2021_v63, %v2032_v4 }
 0xd69   : > { %v2034_v6 = vmul.f32 %v2033_v5, %v2033_v5  ;;  %v2042_v29 = vmul.f32 %v2650_v24, %v2033_v5 }
 0xd6b   : > { %v2035_v51 = vsel %vm1025_vm1, %v2034_v6, 0.0 }
 0xd6c   : > { %2036 = vadd.xlane.f32.xlu0 %v2035_v51 }
 0xddf   : > { %v2037_v7 = vpop.xlane.xlu0 %2036 }
 0xde0   : > { %v2038_v8 = vmul.f32 0.032258064, %v2037_v7 }
 0xde2   : > { %2652 = vrsqrt.f32 %v2038_v8  ;;  %vm2050_vm13 = vcmp.eq.f32.partialorder %v2038_v8, inf  ;;  %v2053_v17 = vand.u32 2147483648, %v2038_v8  ;;  %vm2052_vm14 = vcmp.eq.f32.partialorder %v2038_v8, 0.0 }
 0xde8   : > { %v2653_v10 = vpop.eup %2652 }
 0xde9   : > { %v2044_v11 = vmul.f32 %v2653_v10, %v2038_v8 }
 0xdeb   : > { %v2045_v12 = vmul.f32 %v2653_v10, %v2044_v11 }
 0xded   : > { %v2046_v13 = vmul.f32 0.5, %v2045_v12 }
 0xdef   : > { %v2047_v14 = vsub.f32 1.5, %v2046_v13 }
 0xdf1   : > { %v2048_v15 = vmul.f32 %v2653_v10, %v2047_v14 }
 0xdf3   : > { %v2049_v16 = vmul.f32 %v2048_v15, %v2038_v8 }
 0xdf5   : > { %v2051_v18 = vsel %vm2050_vm13, %v2038_v8, %v2049_v16 }
 0xdf6   : > { %v2054_v9 = vsel %vm2052_vm14, %v2053_v17, %v2051_v18 }
 0xdf7   : > { %v2055_v19 = vadd.f32 1e-06, %v2054_v9 }
 0xdf9   : > { %2654 = vrcp.f32 %v2055_v19  ;;  %v2067_v23 = vand.u32 2147483648, %v2055_v19  ;;  %v2065_v26 = vand.u32 2147483647, %v2055_v19  ;;  %vm2061_vm0 = vweird.f32 %v2055_v19 }
 0xdfb   : > { %v2068_v28 = vor.u32 1.1754944e-38, %v2067_v23  ;;  %vm2066_vm3 = vcmp.eq.f32.partialorder %v2065_v26, 8.507059e+37 }
 0xdff   : > { %v2655_v37 = vpop.eup %2654 }
 0xe00   : > { %v2057_v21 = vmul.f32 %v2655_v37, %v2055_v19  ;;  %vm2062_vm15 = vweird.f32 %v2655_v37 }
 0xe01   : > { %vm2063_vm2 = vmor %vm2061_vm0, %vm2062_vm15 }
 0xe02   : > { %v2058_v22 = vsub.f32 1.0, %v2057_v21 }
 0xe04   : > { %v2059_v25 = vmul.f32 %v2655_v37, %v2058_v22 }
 0xe06   : > { %v2060_v27 = vadd.f32 %v2655_v37, %v2059_v25 }
 0xe08   : > { %v2064_v30 = vsel %vm2063_vm2, %v2655_v37, %v2060_v27 }
 0xe09   : > { %v2069_v33 = vsel %vm2066_vm3, %v2068_v28, %v2064_v30 }
 0xe0a   : > { %v2070_v34 = vmul.f32 %v2069_v33, %v2042_v29 }
 0xe0c   : > { %v2074_v35 = vadd.f32 %v2651_v31, %v2070_v34 }
 0xe0e   : > { %2075 = vst.msk [vmem:[%s933_s22] sm:$0xff] %vm1025_vm1, %v2074_v35 }
 0xe0f PF: > { %s3473_s25 = sld [smem:[#allocation16_spill]]  ;;  %s2089_s29 = sshll.u32 %s933_s22, 4  ;;  %s2090_s29 = int_to_ptr.vmem [resolvable:$true] %s2089_s29 }
 0xe10   : > { %s3474_s6 = sld [smem:[#allocation13_spill]] }
 0xe11   : > { %s3476_s19 = sld [smem:[#allocation49_spill]] }
 0xe15   : > { %s2485_s20 = sshll.u32 %s3473_s25, 3 }
 0xe16   : > { %s3477_s30 = sand.u32 1, %s3474_s6  }
 0xe17   : > { %s2087_s24 = scalar_lea.hbm %s3476_s19, %s2485_s20  ;;  %s2077_s14 = scalar_lea.sflag [#allocation10], %s3477_s30 }
 0xe18   : > { %s2091_s2 = sshll.u32 %s2087_s24, 4  ;;  %s2676_s18 = scalar_lea.hbm %s3476_s19, 16  ;;  %s2092_s2 = int_to_ptr.hbm [resolvable:$true] %s2091_s2 }
 0xe19   : > { %s2670_s23 = sshra.s32 %s2092_s2, 4  ;;  %s2671_s23 = int_to_ptr.hbm [resolvable:$true] %s2670_s23 }
 0xe1a   : > { %s2672_s28 = scalar_lea.hbm %s2671_s23, 8  ;;  %p2677_p6 = scmp.lt.s32.totalorder %s2671_s23, %s3476_s19 }
 0xe1b   : > { %p2673_p2 = scmp.ne.s32.totalorder %s2671_s23, %s2672_s28  ;;  %p2678_p7 = scmp.lt.s32.totalorder %s2676_s18, %s2672_s28 }
 0xe1d   : > { %p2674_p4 = pnand %p2673_p2, %p2931_p3  ;;  %p2679_p8 = por %p2678_p7, %p2677_p6 }
 0xe1f   : > { %p2675_p5 = pneg %p2674_p4 }
 0xe21   : > { %p2680_p10 = pnand %p2679_p8, %p2675_p5 }
 0xe23   : > { %2683 = shalt.err (!%p2680_p10)
}
 0xe24   : > { %2511 = dma.vmem_to_hbm [thread:$0]  (%p2931_p3), %s2090_s29, 128, %s2092_s2, %s2077_s14  }
 0xe25 PF: > { %s3478_s0 = sld [smem:[#allocation19_spill]] }
 0xe26   : > { %s3479_s22 = sld [smem:[#allocation12_spill]] }
 0xe2b   : > { %p2517_p11 = scmp.ge.s32.totalorder %s3478_s0, 2 }
 0xe2c   : > { %s2103_s9 = sand.u32 1, %s3479_s22  }
 0xe2d   : > { %p2514_p12 = pnand %p2517_p11, %p2941_p9  ;;  %s2104_s3 = scalar_lea.sflag [#allocation10], %s2103_s9 }
 0xe2f   : > { %p2515_p13 = pneg %p2514_p12 }
 0xe31   : > { %2717 = dma.done.wait (%p2515_p13), %s2104_s3, 128  }
 0xe32   : > { %2719 = vsyncadd (%p2515_p13), %s2104_s3, 4294967168  ;;  %s35_s1 = sadd.s32 1, %s3478_s0   ;;  %s3481_s3 = sld [smem:[#allocation13_spill]] }
 0xe33   : > { %p32_p0 = scmp.ge.s32.totalorder %s35_s1, 6   ;;  %s3482_s28 = sld [smem:[#allocation14_spill]] }
 0xe34   : > { %s3483_s29 = sld [smem:[#allocation24_spill]] }
 0xe35   : > { %s3484_s30 = sld [smem:[#allocation17_spill]]  ;;  %34 = sbr.rel (!%p32_p0) target bundleno = 27 (0x1b), region = 223 }
 0xe36   : > { %s3485_s4 = sld [smem:[#allocation18_spill]] }
 0xe37   : > { %s3486_s0 = sld [smem:[#allocation20_spill]] }
 0xe38   : > { %s3487_s23 = sld [smem:[#allocation22_spill]] }
 0xe3a   :  { %2110 = vsyncpa [#allocation10], 1 }
 0xe3b   :  { %2112 = vsyncpa [#allocation10 + $0x1], 1 }

</bundles_post_ra>
